<compile_context>
chip_gen: v7x
topology: tpu7x:2x2x1
jax: 0.10.0
libtpu: 0.0.40
codegen_flags: <defaults>
</compile_context>

<pallas_src>
import jax
import jax.numpy as jnp
from jax.experimental import pallas as pl
from jax.experimental.pallas import tpu as pltpu

# ----------------------------- configuration --------------------------------
NUM_NODE_FEATS = 4
OUTPUT_DIM = 8
LATENT_DIM = [32, 32, 32, 1]
TOTAL_LATENT = sum(LATENT_DIM)              # 97
K = 10                                      # sortpooling k (small & even)
C1 = 16                                     # conv1d_channels[0]
C2 = 32                                     # conv1d_channels[1]
CONV2_KW = 5                                # conv1d_kws[1]
POOL_LEN = (K - 2) // 2 + 1                 # after MaxPool1d(2,2)   -> 5
L_OUT = POOL_LEN - CONV2_KW + 1             # after second Conv1d    -> 1
DENSE_DIM = L_OUT * C2                      # 32

NUM_LAYERS = len(LATENT_DIM)                # 4
GNN_PAD = max(max(LATENT_DIM), NUM_NODE_FEATS)   # 32  (uniform per-layer width)
PADDED_LATENT = NUM_LAYERS * GNN_PAD             # 128 (lane-dense message width)

NODE_SIZES = [7, 12]                        # per-graph node counts      (N = 19)
EDGE_SIZES = [4, 5]                         # per-graph hyperedge counts (E = 9)
N_TOTAL = sum(NODE_SIZES)
E_TOTAL = sum(EDGE_SIZES)
NUM_GRAPHS = len(NODE_SIZES)

# layout invariants the fused kernel relies on (all hold for this configuration)
assert K % 2 == 0                                        # clean MaxPool1d(2,2)
assert L_OUT == 1                                        # conv2 window == pooled length
assert all(d == GNN_PAD for d in LATENT_DIM[:-1])        # padded concat == torch channel order
assert TOTAL_LATENT <= PADDED_LATENT


# ----------------------------- the fused Pallas kernel -----------------------
def dgcnn_kernel(f2n_ref, n2f_ref, x_ref, w_ref, be_ref, bn_ref,
                 w1_ref, b1_ref, w2_ref, b2_ref, wd_ref, bd_ref,
                 o_ref, msg_ref):
    """Whole DGCNN forward for the whole batch in one kernel invocation."""
    N = N_TOTAL
    P = GNN_PAD
    f32 = jnp.float32

    f2n_s = f2n_ref[...]          # (E, N)  pre-scaled by 1/hyperedge_size
    n2f_s = n2f_ref[...]          # (N, E)  pre-scaled by 1/node_hdeg
    cur = x_ref[...]              # (N, NUM_NODE_FEATS) raw node features

    # ---- 8 graph-conv half-layers (fully unrolled, all in registers/VMEM) ----
    for lv in range(NUM_LAYERS):
        he, hn = 2 * lv, 2 * lv + 1
        din_e = NUM_NODE_FEATS if lv == 0 else P
        c_e = P * (he % 4)
        c_n = P * (hn % 4)
        w_e = w_ref[he // 4, 0:din_e, c_e:c_e + P]                      # (din_e, P)
        w_n = w_ref[hn // 4, 0:P, c_n:c_n + P]                          # (P, P)

        # hyperedge half-layer: tanh(((f2n @ cur) @ W + b) / hyperedge_size)
        pe = jnp.dot(f2n_s, cur, preferred_element_type=f32)            # (E, din_e)
        ce = jnp.tanh(jnp.dot(pe, w_e, preferred_element_type=f32)
                      + be_ref[:, P * lv:P * (lv + 1)])                 # (E, P)

        # node half-layer: tanh(((n2f @ ce) @ W + b) / node_hdeg)
        pn = jnp.dot(n2f_s, ce, preferred_element_type=f32)             # (N, P)
        cur = jnp.tanh(jnp.dot(pn, w_n, preferred_element_type=f32)
                       + bn_ref[:, P * lv:P * (lv + 1)])                # (N, P)

        # lane-slice write of this layer's contribution to the concatenated message
        msg_ref[:, P * lv:P * (lv + 1)] = cur

    # ---- in-kernel sort pooling (top-K rows per graph, descending) -----------
    msg = msg_ref[...]                      # (N, 128); lanes 97..127 are exactly 0
    s_col = cur[:, 0:1]                     # (N, 1) sort channel = last real latent col

    sub = jax.lax.broadcasted_iota(jnp.int32, (N, N), 0)   # row index j
    lan = jax.lax.broadcasted_iota(jnp.int32, (N, N), 1)   # col index i
    # lane-oriented copy of the sort channel (sublane->lane move via masked reduce)
    s_row = jnp.sum(jnp.where(sub == lan, s_col, 0.0), axis=0, keepdims=True)   # (1, N)

    same = None                             # same-graph mask from static offsets
    gid_row = None                          # per-node graph id along lanes
    col1 = jax.lax.broadcasted_iota(jnp.int32, (1, N), 1)
    off = 0
    for g, n_g in enumerate(NODE_SIZES):
        blk = ((sub >= off) & (sub < off + n_g)) & ((lan >= off) & (lan < off + n_g))
        same = blk if same is None else (same | blk)
        if g > 0:
            step = jnp.where(col1 >= off, 1.0, 0.0)        # graph id = #boundaries crossed
            gid_row = step if gid_row is None else gid_row + step
        off += n_g
    if gid_row is None:
        gid_row = jnp.zeros((1, N), f32)

    # stable within-graph descending rank (ties broken by lower node index; torch.topk
    # tie order is unspecified, so tied values may come out in a different order)
    beats = same & ((s_col > s_row) | ((s_col == s_row) & (sub < lan)))
    rank_row = jnp.sum(jnp.where(beats, 1.0, 0.0), axis=0, keepdims=True)       # (1, N)

    # permutation / zero-padding matrix: sort-pool slot g*K + r <- node with rank r in
    # graph g; graphs with fewer than K nodes get all-zero rows (== torch zero padding).
    target = gid_row * float(K) + rank_row                                      # (1, N)
    slot = jax.lax.broadcasted_iota(jnp.int32, (NUM_GRAPHS * K, N), 0).astype(f32)
    perm = jnp.where((slot == target) & (rank_row < float(K)), 1.0, 0.0)        # (B*K, N)
    topk = jnp.dot(perm, msg, preferred_element_type=f32)                       # (B*K, 128)

    # ---- conv1d #1 (kernel == stride == TOTAL_LATENT) + ReLU ------------------
    # one lane-dense 128-deep matmul; zero-padded sort-pool rows correctly get relu(b1)
    h1 = jnp.maximum(jnp.dot(topk, w1_ref[...], preferred_element_type=f32)
                     + b1_ref[...], 0.0)                                        # (B*K, C1)

    # ---- MaxPool1d(2,2) + im2col flatten for conv1d #2 ------------------------
    graph_rows = []
    for g in range(NUM_GRAPHS):
        parts = []
        for q in range(POOL_LEN):
            r0 = g * K + 2 * q
            parts.append(jnp.maximum(h1[r0:r0 + 1, :], h1[r0 + 1:r0 + 2, :]))   # (1, C1)
        graph_rows.append(jnp.concatenate(parts, axis=1))                       # (1, POOL_LEN*C1)
    pooled = jnp.concatenate(graph_rows, axis=0)                                # (B, POOL_LEN*C1)

    # ---- conv1d #2 (+ReLU) and dense head (+ReLU) -----------------------------
    h2 = jnp.maximum(jnp.dot(pooled, w2_ref[...], preferred_element_type=f32)
                     + b2_ref[...], 0.0)                                        # (B, C2)
    out = jnp.dot(h2, wd_ref[...], preferred_element_type=f32) + bd_ref[...]    # (B, OUT)
    o_ref[...] = jnp.maximum(out, 0.0)     # torch applies the final ReLU twice; idempotent


# ----------------------------- wrapper ----------------------------------------
def _whole_block(shape):
    zeros = (0,) * len(shape)
    return pl.BlockSpec(shape, lambda i, _z=zeros: _z)


def _dgcnn_forward(f2n_s, n2f_s, x, w_stack, be_stack, bn_stack,
                   w1p, b1, w2f, b2, wd, bd):
    args = (f2n_s, n2f_s, x, w_stack, be_stack, bn_stack, w1p, b1, w2f, b2, wd, bd)
    # TODO(synk): for large graph batches, add a "parallel" leading grid axis over
    # node-row blocks so v7x's second TensorCore is used; at N=19 one step is optimal.
    return pl.pallas_call(
        dgcnn_kernel,
        out_shape=jax.ShapeDtypeStruct((NUM_GRAPHS, OUTPUT_DIM), jnp.float32),
        grid=(1,),
        in_specs=[_whole_block(a.shape) for a in args],
        out_specs=_whole_block((NUM_GRAPHS, OUTPUT_DIM)),
        scratch_shapes=[pltpu.VMEM((N_TOTAL, PADDED_LATENT), jnp.float32)],
        compiler_params=pltpu.CompilerParams(dimension_semantics=("arbitrary",)),
    )(*args)


dgcnn_forward = jax.jit(_dgcnn_forward)


# ----------------------------- one-time parameter packing (outside the jit) ----
def prepack_params(H, conv_ws, conv_bs, w1, w2):
    """Run ONCE at setup: fold degree reciprocals into adjacency + biases and pack
    the GNN / conv-head weights into the lane-dense layouts the kernel expects."""
    n2f = H                                                        # (N, E)
    f2n = H.T                                                      # (E, N)
    # the +1.0 matches the torch forward (hdegs + 1, hyperedge_sizes + 1) and keeps
    # the reciprocals finite for isolated nodes / empty hyperedges.
    inv_deg = 1.0 / (jnp.sum(H, axis=1, keepdims=True) + 1.0)      # (N, 1)
    inv_hes = 1.0 / (jnp.sum(H, axis=0, keepdims=True).T + 1.0)    # (E, 1)

    f2n_s = inv_hes * f2n          # (A@X)/r == (r^-1 * A)@X : fold /hyperedge_size
    n2f_s = inv_deg * n2f          # fold /node_hdeg

    P = GNN_PAD
    w_stack = jnp.zeros((2, P, NUM_LAYERS * P), jnp.float32)       # lane-dense (2,32,128)
    be_stack = jnp.zeros((E_TOTAL, NUM_LAYERS * P), jnp.float32)   # per-edge scaled biases
    bn_stack = jnp.zeros((N_TOTAL, NUM_LAYERS * P), jnp.float32)   # per-node scaled biases
    for h in range(2 * NUM_LAYERS):
        W = conv_ws[h]                                             # (din, dout)
        b = conv_bs[h][0]                                          # (dout,)
        din, dout = W.shape
        c0 = P * (h % 4)
        w_stack = w_stack.at[h // 4, :din, c0:c0 + dout].set(W)
        lv = h // 2
        if h % 2 == 0:     # hyperedge half-layer: bias is divided by hyperedge size
            be_stack = be_stack.at[:, P * lv:P * lv + dout].set(b[None, :] * inv_hes)
        else:              # node half-layer: bias is divided by node hyper-degree
            bn_stack = bn_stack.at[:, P * lv:P * lv + dout].set(b[None, :] * inv_deg)

    w1p = jnp.zeros((PADDED_LATENT, C1), jnp.float32).at[:TOTAL_LATENT, :].set(w1)
    w2f = w2.reshape(CONV2_KW * C1, C2)                            # (kw*C1, C2)
    return f2n_s, n2f_s, w_stack, be_stack, bn_stack, w1p, w2f


# ----------------------------- main --------------------------------------------
if __name__ == "__main__":
    key = jax.random.PRNGKey(0)
    ks = jax.random.split(key, 32)
    ki = iter(range(32))

    # synthetic block-diagonal incidence (node x hyperedge) per graph
    H = jnp.zeros((N_TOTAL, E_TOTAL), jnp.float32)
    no, eo = 0, 0
    for n_i, e_i in zip(NODE_SIZES, EDGE_SIZES):
        blk = jax.random.bernoulli(ks[next(ki)], 0.5, (n_i, e_i)).astype(jnp.float32)
        H = H.at[no:no + n_i, eo:eo + e_i].set(blk)
        no += n_i
        eo += e_i

    node_feat = jax.random.normal(ks[next(ki)], (N_TOTAL, NUM_NODE_FEATS), jnp.float32)

    # graph-conv Linear stack: same 8 Linears, in order, as the torch ModuleList
    # (the trailing (1,1) Linear IS used by the torch forward as the 8th half-layer)
    dims = [(NUM_NODE_FEATS, LATENT_DIM[0])]
    for i in range(1, NUM_LAYERS):
        dims.append((LATENT_DIM[i - 1], LATENT_DIM[i - 1]))
        dims.append((LATENT_DIM[i - 1], LATENT_DIM[i]))
    dims.append((LATENT_DIM[-1], LATENT_DIM[-1]))
    conv_ws, conv_bs = [], []
    for din, dout in dims:
        conv_ws.append(0.1 * jax.random.normal(ks[next(ki)], (din, dout), jnp.float32))
        conv_bs.append(0.01 * jax.random.normal(ks[next(ki)], (1, dout), jnp.float32))

    # conv1d / dense parameters
    w1 = 0.1 * jax.random.normal(ks[next(ki)], (TOTAL_LATENT, C1), jnp.float32)
    b1 = 0.01 * jax.random.normal(ks[next(ki)], (1, C1), jnp.float32)
    w2 = 0.1 * jax.random.normal(ks[next(ki)], (CONV2_KW, C1, C2), jnp.float32)
    b2 = 0.01 * jax.random.normal(ks[next(ki)], (1, C2), jnp.float32)
    wd = 0.1 * jax.random.normal(ks[next(ki)], (DENSE_DIM, OUTPUT_DIM), jnp.float32)
    bd = 0.01 * jax.random.normal(ks[next(ki)], (1, OUTPUT_DIM), jnp.float32)

    # one-time packing OUTSIDE the jitted hot path (review item #1)
    f2n_s, n2f_s, w_stack, be_stack, bn_stack, w1p, w2f = prepack_params(
        H, conv_ws, conv_bs, w1, w2)

    out = dgcnn_forward(f2n_s, n2f_s, node_feat, w_stack, be_stack, bn_stack,
                        w1p, b1, w2f, b2, wd, bd)
    jax.block_until_ready(out)
    assert out.shape == (NUM_GRAPHS, OUTPUT_DIM)
    assert bool(jnp.all(jnp.isfinite(out)))
    print("KERNEL_OK")
</pallas_src>

<mosaic_0001>
module attributes {stable_mosaic.version = 11 : i64} {
  func.func @dgcnn_kernel(%arg0: i32, %arg1: memref<9x19xf32, #tpu.memory_space<vmem>>, %arg2: memref<19x9xf32, #tpu.memory_space<vmem>>, %arg3: memref<19x4xf32, #tpu.memory_space<vmem>>, %arg4: memref<2x32x128xf32, #tpu.memory_space<vmem>>, %arg5: memref<9x128xf32, #tpu.memory_space<vmem>>, %arg6: memref<19x128xf32, #tpu.memory_space<vmem>>, %arg7: memref<128x16xf32, #tpu.memory_space<vmem>>, %arg8: memref<1x16xf32, #tpu.memory_space<vmem>>, %arg9: memref<80x32xf32, #tpu.memory_space<vmem>>, %arg10: memref<1x32xf32, #tpu.memory_space<vmem>>, %arg11: memref<32x8xf32, #tpu.memory_space<vmem>>, %arg12: memref<1x8xf32, #tpu.memory_space<vmem>>, %arg13: memref<2x8xf32, #tpu.memory_space<vmem>>, %arg14: memref<19x128xf32, #tpu.memory_space<vmem>>) attributes {dimension_semantics = [#tpu.dimension_semantics<arbitrary>], iteration_bounds = array<i64: 1>, scalar_prefetch = 0 : i64, scratch_operands = 1 : i64, tpu.core_type = #tpu.core_type<tc>, window_params = [{pipeline_mode = #tpu.pipeline_mode<synchronous>, transform_indices = @transform_0, window_bounds = array<i64: 9, 19>}, {pipeline_mode = #tpu.pipeline_mode<synchronous>, transform_indices = @transform_1, window_bounds = array<i64: 19, 9>}, {pipeline_mode = #tpu.pipeline_mode<synchronous>, transform_indices = @transform_2, window_bounds = array<i64: 19, 4>}, {pipeline_mode = #tpu.pipeline_mode<synchronous>, transform_indices = @transform_3, window_bounds = array<i64: 2, 32, 128>}, {pipeline_mode = #tpu.pipeline_mode<synchronous>, transform_indices = @transform_4, window_bounds = array<i64: 9, 128>}, {pipeline_mode = #tpu.pipeline_mode<synchronous>, transform_indices = @transform_5, window_bounds = array<i64: 19, 128>}, {pipeline_mode = #tpu.pipeline_mode<synchronous>, transform_indices = @transform_6, window_bounds = array<i64: 128, 16>}, {pipeline_mode = #tpu.pipeline_mode<synchronous>, transform_indices = @transform_7, window_bounds = array<i64: 1, 16>}, {pipeline_mode = #tpu.pipeline_mode<synchronous>, transform_indices = @transform_8, window_bounds = array<i64: 80, 32>}, {pipeline_mode = #tpu.pipeline_mode<synchronous>, transform_indices = @transform_9, window_bounds = array<i64: 1, 32>}, {pipeline_mode = #tpu.pipeline_mode<synchronous>, transform_indices = @transform_10, window_bounds = array<i64: 32, 8>}, {pipeline_mode = #tpu.pipeline_mode<synchronous>, transform_indices = @transform_11, window_bounds = array<i64: 1, 8>}, {pipeline_mode = #tpu.pipeline_mode<synchronous>, transform_indices = @transform_12, window_bounds = array<i64: 2, 8>}]} {
    %c0 = arith.constant 0 : index
    %c0_0 = arith.constant 0 : index
    %0 = vector.load %arg1[%c0, %c0_0] : memref<9x19xf32, #tpu.memory_space<vmem>>, vector<9x19xf32>
    %c0_1 = arith.constant 0 : index
    %c0_2 = arith.constant 0 : index
    %1 = vector.load %arg2[%c0_1, %c0_2] : memref<19x9xf32, #tpu.memory_space<vmem>>, vector<19x9xf32>
    %c0_3 = arith.constant 0 : index
    %c0_4 = arith.constant 0 : index
    %2 = vector.load %arg3[%c0_3, %c0_4] : memref<19x4xf32, #tpu.memory_space<vmem>>, vector<19x4xf32>
    %c0_5 = arith.constant 0 : index
    %c0_6 = arith.constant 0 : index
    %c0_7 = arith.constant 0 : index
    %3 = vector.load %arg4[%c0_5, %c0_6, %c0_7] : memref<2x32x128xf32, #tpu.memory_space<vmem>>, vector<1x4x32xf32>
    %4 = vector.shape_cast %3 : vector<1x4x32xf32> to vector<4x32xf32>
    %c0_8 = arith.constant 0 : index
    %c0_9 = arith.constant 0 : index
    %c32 = arith.constant 32 : index
    %5 = vector.load %arg4[%c0_8, %c0_9, %c32] : memref<2x32x128xf32, #tpu.memory_space<vmem>>, vector<1x32x32xf32>
    %6 = vector.shape_cast %5 : vector<1x32x32xf32> to vector<32x32xf32>
    %cst = arith.constant dense<0.000000e+00> : vector<9x4xf32>
    %7 = tpu.matmul %0, %2, %cst {dimension_numbers = #tpu.dot_dimension_numbers<[1], [0], [0], [1], [0, 0, 1, 1], [], []>} : vector<9x19xf32>, vector<19x4xf32>, vector<9x4xf32> -> vector<9x4xf32>
    %cst_10 = arith.constant dense<0.000000e+00> : vector<9x32xf32>
    %8 = tpu.matmul %7, %4, %cst_10 {dimension_numbers = #tpu.dot_dimension_numbers<[1], [0], [0], [1], [0, 0, 1, 1], [], []>} : vector<9x4xf32>, vector<4x32xf32>, vector<9x32xf32> -> vector<9x32xf32>
    %c0_11 = arith.constant 0 : index
    %c0_12 = arith.constant 0 : index
    %9 = vector.load %arg5[%c0_11, %c0_12] : memref<9x128xf32, #tpu.memory_space<vmem>>, vector<9x32xf32>
    %10 = arith.addf %8, %9 : vector<9x32xf32>
    %11 = math.tanh %10 : vector<9x32xf32>
    %cst_13 = arith.constant dense<0.000000e+00> : vector<19x32xf32>
    %12 = tpu.matmul %1, %11, %cst_13 {dimension_numbers = #tpu.dot_dimension_numbers<[1], [0], [0], [1], [0, 0, 1, 1], [], []>} : vector<19x9xf32>, vector<9x32xf32>, vector<19x32xf32> -> vector<19x32xf32>
    %cst_14 = arith.constant dense<0.000000e+00> : vector<19x32xf32>
    %13 = tpu.matmul %12, %6, %cst_14 {dimension_numbers = #tpu.dot_dimension_numbers<[1], [0], [0], [1], [0, 0, 1, 1], [], []>} : vector<19x32xf32>, vector<32x32xf32>, vector<19x32xf32> -> vector<19x32xf32>
    %c0_15 = arith.constant 0 : index
    %c0_16 = arith.constant 0 : index
    %14 = vector.load %arg6[%c0_15, %c0_16] : memref<19x128xf32, #tpu.memory_space<vmem>>, vector<19x32xf32>
    %15 = arith.addf %13, %14 : vector<19x32xf32>
    %16 = math.tanh %15 : vector<19x32xf32>
    %c0_17 = arith.constant 0 : index
    %c0_18 = arith.constant 0 : index
    %17 = vector.load %arg14[%c0_17, %c0_18] : memref<19x128xf32, #tpu.memory_space<vmem>>, vector<19x32xf32>
    tpu.vector_store %arg14[%c0_17, %c0_18], %16 {strides = array<i32>} : memref<19x128xf32, #tpu.memory_space<vmem>>, vector<19x32xf32>,
    %c0_19 = arith.constant 0 : index
    %c0_20 = arith.constant 0 : index
    %c64 = arith.constant 64 : index
    %18 = vector.load %arg4[%c0_19, %c0_20, %c64] : memref<2x32x128xf32, #tpu.memory_space<vmem>>, vector<1x32x32xf32>
    %19 = vector.shape_cast %18 : vector<1x32x32xf32> to vector<32x32xf32>
    %c0_21 = arith.constant 0 : index
    %c0_22 = arith.constant 0 : index
    %c96 = arith.constant 96 : index
    %20 = vector.load %arg4[%c0_21, %c0_22, %c96] : memref<2x32x128xf32, #tpu.memory_space<vmem>>, vector<1x32x32xf32>
    %21 = vector.shape_cast %20 : vector<1x32x32xf32> to vector<32x32xf32>
    %cst_23 = arith.constant dense<0.000000e+00> : vector<9x32xf32>
    %22 = tpu.matmul %0, %16, %cst_23 {dimension_numbers = #tpu.dot_dimension_numbers<[1], [0], [0], [1], [0, 0, 1, 1], [], []>} : vector<9x19xf32>, vector<19x32xf32>, vector<9x32xf32> -> vector<9x32xf32>
    %cst_24 = arith.constant dense<0.000000e+00> : vector<9x32xf32>
    %23 = tpu.matmul %22, %19, %cst_24 {dimension_numbers = #tpu.dot_dimension_numbers<[1], [0], [0], [1], [0, 0, 1, 1], [], []>} : vector<9x32xf32>, vector<32x32xf32>, vector<9x32xf32> -> vector<9x32xf32>
    %c0_25 = arith.constant 0 : index
    %c32_26 = arith.constant 32 : index
    %24 = vector.load %arg5[%c0_25, %c32_26] : memref<9x128xf32, #tpu.memory_space<vmem>>, vector<9x32xf32>
    %25 = arith.addf %23, %24 : vector<9x32xf32>
    %26 = math.tanh %25 : vector<9x32xf32>
    %cst_27 = arith.constant dense<0.000000e+00> : vector<19x32xf32>
    %27 = tpu.matmul %1, %26, %cst_27 {dimension_numbers = #tpu.dot_dimension_numbers<[1], [0], [0], [1], [0, 0, 1, 1], [], []>} : vector<19x9xf32>, vector<9x32xf32>, vector<19x32xf32> -> vector<19x32xf32>
    %cst_28 = arith.constant dense<0.000000e+00> : vector<19x32xf32>
    %28 = tpu.matmul %27, %21, %cst_28 {dimension_numbers = #tpu.dot_dimension_numbers<[1], [0], [0], [1], [0, 0, 1, 1], [], []>} : vector<19x32xf32>, vector<32x32xf32>, vector<19x32xf32> -> vector<19x32xf32>
    %c0_29 = arith.constant 0 : index
    %c32_30 = arith.constant 32 : index
    %29 = vector.load %arg6[%c0_29, %c32_30] : memref<19x128xf32, #tpu.memory_space<vmem>>, vector<19x32xf32>
    %30 = arith.addf %28, %29 : vector<19x32xf32>
    %31 = math.tanh %30 : vector<19x32xf32>
    %c0_31 = arith.constant 0 : index
    %c32_32 = arith.constant 32 : index
    %32 = vector.load %arg14[%c0_31, %c32_32] : memref<19x128xf32, #tpu.memory_space<vmem>>, vector<19x32xf32>
    tpu.vector_store %arg14[%c0_31, %c32_32], %31 {strides = array<i32>} : memref<19x128xf32, #tpu.memory_space<vmem>>, vector<19x32xf32>,
    %c1 = arith.constant 1 : index
    %c0_33 = arith.constant 0 : index
    %c0_34 = arith.constant 0 : index
    %33 = vector.load %arg4[%c1, %c0_33, %c0_34] : memref<2x32x128xf32, #tpu.memory_space<vmem>>, vector<1x32x32xf32>
    %34 = vector.shape_cast %33 : vector<1x32x32xf32> to vector<32x32xf32>
    %c1_35 = arith.constant 1 : index
    %c0_36 = arith.constant 0 : index
    %c32_37 = arith.constant 32 : index
    %35 = vector.load %arg4[%c1_35, %c0_36, %c32_37] : memref<2x32x128xf32, #tpu.memory_space<vmem>>, vector<1x32x32xf32>
    %36 = vector.shape_cast %35 : vector<1x32x32xf32> to vector<32x32xf32>
    %cst_38 = arith.constant dense<0.000000e+00> : vector<9x32xf32>
    %37 = tpu.matmul %0, %31, %cst_38 {dimension_numbers = #tpu.dot_dimension_numbers<[1], [0], [0], [1], [0, 0, 1, 1], [], []>} : vector<9x19xf32>, vector<19x32xf32>, vector<9x32xf32> -> vector<9x32xf32>
    %cst_39 = arith.constant dense<0.000000e+00> : vector<9x32xf32>
    %38 = tpu.matmul %37, %34, %cst_39 {dimension_numbers = #tpu.dot_dimension_numbers<[1], [0], [0], [1], [0, 0, 1, 1], [], []>} : vector<9x32xf32>, vector<32x32xf32>, vector<9x32xf32> -> vector<9x32xf32>
    %c0_40 = arith.constant 0 : index
    %c64_41 = arith.constant 64 : index
    %39 = vector.load %arg5[%c0_40, %c64_41] : memref<9x128xf32, #tpu.memory_space<vmem>>, vector<9x32xf32>
    %40 = arith.addf %38, %39 : vector<9x32xf32>
    %41 = math.tanh %40 : vector<9x32xf32>
    %cst_42 = arith.constant dense<0.000000e+00> : vector<19x32xf32>
    %42 = tpu.matmul %1, %41, %cst_42 {dimension_numbers = #tpu.dot_dimension_numbers<[1], [0], [0], [1], [0, 0, 1, 1], [], []>} : vector<19x9xf32>, vector<9x32xf32>, vector<19x32xf32> -> vector<19x32xf32>
    %cst_43 = arith.constant dense<0.000000e+00> : vector<19x32xf32>
    %43 = tpu.matmul %42, %36, %cst_43 {dimension_numbers = #tpu.dot_dimension_numbers<[1], [0], [0], [1], [0, 0, 1, 1], [], []>} : vector<19x32xf32>, vector<32x32xf32>, vector<19x32xf32> -> vector<19x32xf32>
    %c0_44 = arith.constant 0 : index
    %c64_45 = arith.constant 64 : index
    %44 = vector.load %arg6[%c0_44, %c64_45] : memref<19x128xf32, #tpu.memory_space<vmem>>, vector<19x32xf32>
    %45 = arith.addf %43, %44 : vector<19x32xf32>
    %46 = math.tanh %45 : vector<19x32xf32>
    %c0_46 = arith.constant 0 : index
    %c64_47 = arith.constant 64 : index
    %47 = vector.load %arg14[%c0_46, %c64_47] : memref<19x128xf32, #tpu.memory_space<vmem>>, vector<19x32xf32>
    tpu.vector_store %arg14[%c0_46, %c64_47], %46 {strides = array<i32>} : memref<19x128xf32, #tpu.memory_space<vmem>>, vector<19x32xf32>,
    %c1_48 = arith.constant 1 : index
    %c0_49 = arith.constant 0 : index
    %c64_50 = arith.constant 64 : index
    %48 = vector.load %arg4[%c1_48, %c0_49, %c64_50] : memref<2x32x128xf32, #tpu.memory_space<vmem>>, vector<1x32x32xf32>
    %49 = vector.shape_cast %48 : vector<1x32x32xf32> to vector<32x32xf32>
    %c1_51 = arith.constant 1 : index
    %c0_52 = arith.constant 0 : index
    %c96_53 = arith.constant 96 : index
    %50 = vector.load %arg4[%c1_51, %c0_52, %c96_53] : memref<2x32x128xf32, #tpu.memory_space<vmem>>, vector<1x32x32xf32>
    %51 = vector.shape_cast %50 : vector<1x32x32xf32> to vector<32x32xf32>
    %cst_54 = arith.constant dense<0.000000e+00> : vector<9x32xf32>
    %52 = tpu.matmul %0, %46, %cst_54 {dimension_numbers = #tpu.dot_dimension_numbers<[1], [0], [0], [1], [0, 0, 1, 1], [], []>} : vector<9x19xf32>, vector<19x32xf32>, vector<9x32xf32> -> vector<9x32xf32>
    %cst_55 = arith.constant dense<0.000000e+00> : vector<9x32xf32>
    %53 = tpu.matmul %52, %49, %cst_55 {dimension_numbers = #tpu.dot_dimension_numbers<[1], [0], [0], [1], [0, 0, 1, 1], [], []>} : vector<9x32xf32>, vector<32x32xf32>, vector<9x32xf32> -> vector<9x32xf32>
    %c0_56 = arith.constant 0 : index
    %c96_57 = arith.constant 96 : index
    %54 = vector.load %arg5[%c0_56, %c96_57] : memref<9x128xf32, #tpu.memory_space<vmem>>, vector<9x32xf32>
    %55 = arith.addf %53, %54 : vector<9x32xf32>
    %56 = math.tanh %55 : vector<9x32xf32>
    %cst_58 = arith.constant dense<0.000000e+00> : vector<19x32xf32>
    %57 = tpu.matmul %1, %56, %cst_58 {dimension_numbers = #tpu.dot_dimension_numbers<[1], [0], [0], [1], [0, 0, 1, 1], [], []>} : vector<19x9xf32>, vector<9x32xf32>, vector<19x32xf32> -> vector<19x32xf32>
    %cst_59 = arith.constant dense<0.000000e+00> : vector<19x32xf32>
    %58 = tpu.matmul %57, %51, %cst_59 {dimension_numbers = #tpu.dot_dimension_numbers<[1], [0], [0], [1], [0, 0, 1, 1], [], []>} : vector<19x32xf32>, vector<32x32xf32>, vector<19x32xf32> -> vector<19x32xf32>
    %c0_60 = arith.constant 0 : index
    %c96_61 = arith.constant 96 : index
    %59 = vector.load %arg6[%c0_60, %c96_61] : memref<19x128xf32, #tpu.memory_space<vmem>>, vector<19x32xf32>
    %60 = arith.addf %58, %59 : vector<19x32xf32>
    %61 = math.tanh %60 : vector<19x32xf32>
    %c0_62 = arith.constant 0 : index
    %c96_63 = arith.constant 96 : index
    %62 = vector.load %arg14[%c0_62, %c96_63] : memref<19x128xf32, #tpu.memory_space<vmem>>, vector<19x32xf32>
    tpu.vector_store %arg14[%c0_62, %c96_63], %61 {strides = array<i32>} : memref<19x128xf32, #tpu.memory_space<vmem>>, vector<19x32xf32>,
    %c0_64 = arith.constant 0 : index
    %c0_65 = arith.constant 0 : index
    %63 = vector.load %arg14[%c0_64, %c0_65] : memref<19x128xf32, #tpu.memory_space<vmem>>, vector<19x128xf32>
    %64 = vector.extract_strided_slice %61 {offsets = [0, 0], sizes = [19, 1], strides = [1, 1]} : vector<19x32xf32> to vector<19x1xf32>
    %65 = tpu.iota {dimensions = array<i32: 0>} : vector<19x19xi32>
    %66 = tpu.iota {dimensions = array<i32: 1>} : vector<19x19xi32>
    %67 = arith.cmpi eq, %65, %66 : vector<19x19xi32>
    %cst_66 = arith.constant 0.000000e+00 : f32
    %68 = vector.shape_cast %64 : vector<19x1xf32> to vector<19x1xf32>
    %69 = vector.broadcast %68 : vector<19x1xf32> to vector<19x19xf32>
    %70 = vector.broadcast %cst_66 : f32 to vector<19x19xf32>
    %71 = arith.select %67, %69, %70 : vector<19x19xi1>, vector<19x19xf32>
    %cst_67 = arith.constant dense<0.000000e+00> : vector<19xf32>
    %72 = vector.multi_reduction <add>, %71, %cst_67 [0] : vector<19x19xf32> to vector<19xf32>
    %73 = vector.shape_cast %72 : vector<19xf32> to vector<1x19xf32>
    %74 = tpu.iota {dimensions = array<i32: 1>} : vector<1x19xi32>
    %c0_i32 = arith.constant 0 : i32
    %75 = vector.broadcast %c0_i32 : i32 to vector<19x19xi32>
    %76 = arith.cmpi sge, %65, %75 : vector<19x19xi32>
    %c7_i32 = arith.constant 7 : i32
    %77 = vector.broadcast %c7_i32 : i32 to vector<19x19xi32>
    %78 = arith.cmpi slt, %65, %77 : vector<19x19xi32>
    %79 = arith.andi %76, %78 : vector<19x19xi1>
    %c0_i32_68 = arith.constant 0 : i32
    %80 = vector.broadcast %c0_i32_68 : i32 to vector<19x19xi32>
    %81 = arith.cmpi sge, %66, %80 : vector<19x19xi32>
    %c7_i32_69 = arith.constant 7 : i32
    %82 = vector.broadcast %c7_i32_69 : i32 to vector<19x19xi32>
    %83 = arith.cmpi slt, %66, %82 : vector<19x19xi32>
    %84 = arith.andi %81, %83 : vector<19x19xi1>
    %85 = arith.andi %79, %84 : vector<19x19xi1>
    %c7_i32_70 = arith.constant 7 : i32
    %86 = vector.broadcast %c7_i32_70 : i32 to vector<19x19xi32>
    %87 = arith.cmpi sge, %65, %86 : vector<19x19xi32>
    %c19_i32 = arith.constant 19 : i32
    %88 = vector.broadcast %c19_i32 : i32 to vector<19x19xi32>
    %89 = arith.cmpi slt, %65, %88 : vector<19x19xi32>
    %90 = arith.andi %87, %89 : vector<19x19xi1>
    %c7_i32_71 = arith.constant 7 : i32
    %91 = vector.broadcast %c7_i32_71 : i32 to vector<19x19xi32>
    %92 = arith.cmpi sge, %66, %91 : vector<19x19xi32>
    %c19_i32_72 = arith.constant 19 : i32
    %93 = vector.broadcast %c19_i32_72 : i32 to vector<19x19xi32>
    %94 = arith.cmpi slt, %66, %93 : vector<19x19xi32>
    %95 = arith.andi %92, %94 : vector<19x19xi1>
    %96 = arith.andi %90, %95 : vector<19x19xi1>
    %97 = arith.ori %85, %96 : vector<19x19xi1>
    %c7_i32_73 = arith.constant 7 : i32
    %98 = vector.broadcast %c7_i32_73 : i32 to vector<1x19xi32>
    %99 = arith.cmpi sge, %74, %98 : vector<1x19xi32>
    %cst_74 = arith.constant 1.000000e+00 : f32
    %cst_75 = arith.constant 0.000000e+00 : f32
    %100 = vector.broadcast %cst_74 : f32 to vector<1x19xf32>
    %101 = vector.broadcast %cst_75 : f32 to vector<1x19xf32>
    %102 = arith.select %99, %100, %101 : vector<1x19xi1>, vector<1x19xf32>
    %103 = vector.broadcast %64 : vector<19x1xf32> to vector<19x19xf32>
    %104 = vector.broadcast %73 : vector<1x19xf32> to vector<19x19xf32>
    %105 = arith.cmpf ogt, %103, %104 : vector<19x19xf32>
    %106 = vector.broadcast %64 : vector<19x1xf32> to vector<19x19xf32>
    %107 = vector.broadcast %73 : vector<1x19xf32> to vector<19x19xf32>
    %108 = arith.cmpf oeq, %106, %107 : vector<19x19xf32>
    %109 = arith.cmpi slt, %65, %66 : vector<19x19xi32>
    %110 = arith.andi %108, %109 : vector<19x19xi1>
    %111 = arith.ori %105, %110 : vector<19x19xi1>
    %112 = arith.andi %97, %111 : vector<19x19xi1>
    %cst_76 = arith.constant 1.000000e+00 : f32
    %cst_77 = arith.constant 0.000000e+00 : f32
    %113 = vector.broadcast %cst_76 : f32 to vector<19x19xf32>
    %114 = vector.broadcast %cst_77 : f32 to vector<19x19xf32>
    %115 = arith.select %112, %113, %114 : vector<19x19xi1>, vector<19x19xf32>
    %cst_78 = arith.constant dense<0.000000e+00> : vector<19xf32>
    %116 = vector.multi_reduction <add>, %115, %cst_78 [0] : vector<19x19xf32> to vector<19xf32>
    %117 = vector.shape_cast %116 : vector<19xf32> to vector<1x19xf32>
    %cst_79 = arith.constant 1.000000e+01 : f32
    %118 = vector.broadcast %cst_79 : f32 to vector<1x19xf32>
    %119 = arith.mulf %102, %118 : vector<1x19xf32>
    %120 = arith.addf %119, %117 : vector<1x19xf32>
    %121 = tpu.iota {dimensions = array<i32: 0>} : vector<20x19xi32>
    %122 = arith.sitofp %121 : vector<20x19xi32> to vector<20x19xf32>
    %123 = vector.broadcast %120 : vector<1x19xf32> to vector<20x19xf32>
    %124 = arith.cmpf oeq, %122, %123 : vector<20x19xf32>
    %cst_80 = arith.constant 1.000000e+01 : f32
    %125 = vector.broadcast %cst_80 : f32 to vector<1x19xf32>
    %126 = arith.cmpf olt, %117, %125 : vector<1x19xf32>
    %127 = vector.broadcast %126 : vector<1x19xi1> to vector<20x19xi1>
    %128 = arith.andi %124, %127 : vector<20x19xi1>
    %cst_81 = arith.constant 1.000000e+00 : f32
    %cst_82 = arith.constant 0.000000e+00 : f32
    %129 = vector.broadcast %cst_81 : f32 to vector<20x19xf32>
    %130 = vector.broadcast %cst_82 : f32 to vector<20x19xf32>
    %131 = arith.select %128, %129, %130 : vector<20x19xi1>, vector<20x19xf32>
    %cst_83 = arith.constant dense<0.000000e+00> : vector<20x128xf32>
    %132 = tpu.matmul %131, %63, %cst_83 {dimension_numbers = #tpu.dot_dimension_numbers<[1], [0], [0], [1], [0, 0, 1, 1], [], []>} : vector<20x19xf32>, vector<19x128xf32>, vector<20x128xf32> -> vector<20x128xf32>
    %c0_84 = arith.constant 0 : index
    %c0_85 = arith.constant 0 : index
    %133 = vector.load %arg7[%c0_84, %c0_85] : memref<128x16xf32, #tpu.memory_space<vmem>>, vector<128x16xf32>
    %cst_86 = arith.constant dense<0.000000e+00> : vector<20x16xf32>
    %134 = tpu.matmul %132, %133, %cst_86 {dimension_numbers = #tpu.dot_dimension_numbers<[1], [0], [0], [1], [0, 0, 1, 1], [], []>} : vector<20x128xf32>, vector<128x16xf32>, vector<20x16xf32> -> vector<20x16xf32>
    %c0_87 = arith.constant 0 : index
    %c0_88 = arith.constant 0 : index
    %135 = vector.load %arg8[%c0_87, %c0_88] : memref<1x16xf32, #tpu.memory_space<vmem>>, vector<1x16xf32>
    %136 = vector.broadcast %135 : vector<1x16xf32> to vector<20x16xf32>
    %137 = arith.addf %134, %136 : vector<20x16xf32>
    %cst_89 = arith.constant 0.000000e+00 : f32
    %138 = vector.broadcast %cst_89 : f32 to vector<20x16xf32>
    %139 = arith.maximumf %137, %138 : vector<20x16xf32>
    %140 = vector.extract_strided_slice %139 {offsets = [0, 0], sizes = [1, 16], strides = [1, 1]} : vector<20x16xf32> to vector<1x16xf32>
    %141 = vector.extract_strided_slice %139 {offsets = [1, 0], sizes = [1, 16], strides = [1, 1]} : vector<20x16xf32> to vector<1x16xf32>
    %142 = arith.maximumf %140, %141 : vector<1x16xf32>
    %143 = vector.extract_strided_slice %139 {offsets = [2, 0], sizes = [1, 16], strides = [1, 1]} : vector<20x16xf32> to vector<1x16xf32>
    %144 = vector.extract_strided_slice %139 {offsets = [3, 0], sizes = [1, 16], strides = [1, 1]} : vector<20x16xf32> to vector<1x16xf32>
    %145 = arith.maximumf %143, %144 : vector<1x16xf32>
    %146 = vector.extract_strided_slice %139 {offsets = [4, 0], sizes = [1, 16], strides = [1, 1]} : vector<20x16xf32> to vector<1x16xf32>
    %147 = vector.extract_strided_slice %139 {offsets = [5, 0], sizes = [1, 16], strides = [1, 1]} : vector<20x16xf32> to vector<1x16xf32>
    %148 = arith.maximumf %146, %147 : vector<1x16xf32>
    %149 = vector.extract_strided_slice %139 {offsets = [6, 0], sizes = [1, 16], strides = [1, 1]} : vector<20x16xf32> to vector<1x16xf32>
    %150 = vector.extract_strided_slice %139 {offsets = [7, 0], sizes = [1, 16], strides = [1, 1]} : vector<20x16xf32> to vector<1x16xf32>
    %151 = arith.maximumf %149, %150 : vector<1x16xf32>
    %152 = vector.extract_strided_slice %139 {offsets = [8, 0], sizes = [1, 16], strides = [1, 1]} : vector<20x16xf32> to vector<1x16xf32>
    %153 = vector.extract_strided_slice %139 {offsets = [9, 0], sizes = [1, 16], strides = [1, 1]} : vector<20x16xf32> to vector<1x16xf32>
    %154 = arith.maximumf %152, %153 : vector<1x16xf32>
    %155 = tpu.concatenate %142, %145, %148, %151, %154 in 1 : vector<1x16xf32>, vector<1x16xf32>, vector<1x16xf32>, vector<1x16xf32>, vector<1x16xf32> -> vector<1x80xf32>
    %156 = vector.extract_strided_slice %139 {offsets = [10, 0], sizes = [1, 16], strides = [1, 1]} : vector<20x16xf32> to vector<1x16xf32>
    %157 = vector.extract_strided_slice %139 {offsets = [11, 0], sizes = [1, 16], strides = [1, 1]} : vector<20x16xf32> to vector<1x16xf32>
    %158 = arith.maximumf %156, %157 : vector<1x16xf32>
    %159 = vector.extract_strided_slice %139 {offsets = [12, 0], sizes = [1, 16], strides = [1, 1]} : vector<20x16xf32> to vector<1x16xf32>
    %160 = vector.extract_strided_slice %139 {offsets = [13, 0], sizes = [1, 16], strides = [1, 1]} : vector<20x16xf32> to vector<1x16xf32>
    %161 = arith.maximumf %159, %160 : vector<1x16xf32>
    %162 = vector.extract_strided_slice %139 {offsets = [14, 0], sizes = [1, 16], strides = [1, 1]} : vector<20x16xf32> to vector<1x16xf32>
    %163 = vector.extract_strided_slice %139 {offsets = [15, 0], sizes = [1, 16], strides = [1, 1]} : vector<20x16xf32> to vector<1x16xf32>
    %164 = arith.maximumf %162, %163 : vector<1x16xf32>
    %165 = vector.extract_strided_slice %139 {offsets = [16, 0], sizes = [1, 16], strides = [1, 1]} : vector<20x16xf32> to vector<1x16xf32>
    %166 = vector.extract_strided_slice %139 {offsets = [17, 0], sizes = [1, 16], strides = [1, 1]} : vector<20x16xf32> to vector<1x16xf32>
    %167 = arith.maximumf %165, %166 : vector<1x16xf32>
    %168 = vector.extract_strided_slice %139 {offsets = [18, 0], sizes = [1, 16], strides = [1, 1]} : vector<20x16xf32> to vector<1x16xf32>
    %169 = vector.extract_strided_slice %139 {offsets = [19, 0], sizes = [1, 16], strides = [1, 1]} : vector<20x16xf32> to vector<1x16xf32>
    %170 = arith.maximumf %168, %169 : vector<1x16xf32>
    %171 = tpu.concatenate %158, %161, %164, %167, %170 in 1 : vector<1x16xf32>, vector<1x16xf32>, vector<1x16xf32>, vector<1x16xf32>, vector<1x16xf32> -> vector<1x80xf32>
    %172 = tpu.concatenate %155, %171 in 0 : vector<1x80xf32>, vector<1x80xf32> -> vector<2x80xf32>
    %c0_90 = arith.constant 0 : index
    %c0_91 = arith.constant 0 : index
    %173 = vector.load %arg9[%c0_90, %c0_91] : memref<80x32xf32, #tpu.memory_space<vmem>>, vector<80x32xf32>
    %cst_92 = arith.constant dense<0.000000e+00> : vector<2x32xf32>
    %174 = tpu.matmul %172, %173, %cst_92 {dimension_numbers = #tpu.dot_dimension_numbers<[1], [0], [0], [1], [0, 0, 1, 1], [], []>} : vector<2x80xf32>, vector<80x32xf32>, vector<2x32xf32> -> vector<2x32xf32>
    %c0_93 = arith.constant 0 : index
    %c0_94 = arith.constant 0 : index
    %175 = vector.load %arg10[%c0_93, %c0_94] : memref<1x32xf32, #tpu.memory_space<vmem>>, vector<1x32xf32>
    %176 = vector.broadcast %175 : vector<1x32xf32> to vector<2x32xf32>
    %177 = arith.addf %174, %176 : vector<2x32xf32>
    %cst_95 = arith.constant 0.000000e+00 : f32
    %178 = vector.broadcast %cst_95 : f32 to vector<2x32xf32>
    %179 = arith.maximumf %177, %178 : vector<2x32xf32>
    %c0_96 = arith.constant 0 : index
    %c0_97 = arith.constant 0 : index
    %180 = vector.load %arg11[%c0_96, %c0_97] : memref<32x8xf32, #tpu.memory_space<vmem>>, vector<32x8xf32>
    %cst_98 = arith.constant dense<0.000000e+00> : vector<2x8xf32>
    %181 = tpu.matmul %179, %180, %cst_98 {dimension_numbers = #tpu.dot_dimension_numbers<[1], [0], [0], [1], [0, 0, 1, 1], [], []>} : vector<2x32xf32>, vector<32x8xf32>, vector<2x8xf32> -> vector<2x8xf32>
    %c0_99 = arith.constant 0 : index
    %c0_100 = arith.constant 0 : index
    %182 = vector.load %arg12[%c0_99, %c0_100] : memref<1x8xf32, #tpu.memory_space<vmem>>, vector<1x8xf32>
    %183 = vector.broadcast %182 : vector<1x8xf32> to vector<2x8xf32>
    %184 = arith.addf %181, %183 : vector<2x8xf32>
    %cst_101 = arith.constant 0.000000e+00 : f32
    %185 = vector.broadcast %cst_101 : f32 to vector<2x8xf32>
    %186 = arith.maximumf %184, %185 : vector<2x8xf32>
    %c0_102 = arith.constant 0 : index
    %c0_103 = arith.constant 0 : index
    %187 = vector.load %arg13[%c0_102, %c0_103] : memref<2x8xf32, #tpu.memory_space<vmem>>, vector<2x8xf32>
    tpu.vector_store %arg13[%c0_102, %c0_103], %186 {strides = array<i32>} : memref<2x8xf32, #tpu.memory_space<vmem>>, vector<2x8xf32>,
    return
  }
  func.func @transform_0(%arg0: i32) -> (i32, i32) {
    %c0_i32 = arith.constant 0 : i32
    %c0_i32_0 = arith.constant 0 : i32
    %c0_i32_1 = arith.constant 0 : i32
    return %c0_i32, %c0_i32_0 : i32, i32
  }
  func.func @transform_1(%arg0: i32) -> (i32, i32) {
    %c0_i32 = arith.constant 0 : i32
    %c0_i32_0 = arith.constant 0 : i32
    %c0_i32_1 = arith.constant 0 : i32
    return %c0_i32, %c0_i32_0 : i32, i32
  }
  func.func @transform_2(%arg0: i32) -> (i32, i32) {
    %c0_i32 = arith.constant 0 : i32
    %c0_i32_0 = arith.constant 0 : i32
    %c0_i32_1 = arith.constant 0 : i32
    return %c0_i32, %c0_i32_0 : i32, i32
  }
  func.func @transform_3(%arg0: i32) -> (i32, i32, i32) {
    %c0_i32 = arith.constant 0 : i32
    %c0_i32_0 = arith.constant 0 : i32
    %c0_i32_1 = arith.constant 0 : i32
    %c0_i32_2 = arith.constant 0 : i32
    return %c0_i32, %c0_i32_0, %c0_i32_1 : i32, i32, i32
  }
  func.func @transform_4(%arg0: i32) -> (i32, i32) {
    %c0_i32 = arith.constant 0 : i32
    %c0_i32_0 = arith.constant 0 : i32
    %c0_i32_1 = arith.constant 0 : i32
    return %c0_i32, %c0_i32_0 : i32, i32
  }
  func.func @transform_5(%arg0: i32) -> (i32, i32) {
    %c0_i32 = arith.constant 0 : i32
    %c0_i32_0 = arith.constant 0 : i32
    %c0_i32_1 = arith.constant 0 : i32
    return %c0_i32, %c0_i32_0 : i32, i32
  }
  func.func @transform_6(%arg0: i32) -> (i32, i32) {
    %c0_i32 = arith.constant 0 : i32
    %c0_i32_0 = arith.constant 0 : i32
    %c0_i32_1 = arith.constant 0 : i32
    return %c0_i32, %c0_i32_0 : i32, i32
  }
  func.func @transform_7(%arg0: i32) -> (i32, i32) {
    %c0_i32 = arith.constant 0 : i32
    %c0_i32_0 = arith.constant 0 : i32
    %c0_i32_1 = arith.constant 0 : i32
    return %c0_i32, %c0_i32_0 : i32, i32
  }
  func.func @transform_8(%arg0: i32) -> (i32, i32) {
    %c0_i32 = arith.constant 0 : i32
    %c0_i32_0 = arith.constant 0 : i32
    %c0_i32_1 = arith.constant 0 : i32
    return %c0_i32, %c0_i32_0 : i32, i32
  }
  func.func @transform_9(%arg0: i32) -> (i32, i32) {
    %c0_i32 = arith.constant 0 : i32
    %c0_i32_0 = arith.constant 0 : i32
    %c0_i32_1 = arith.constant 0 : i32
    return %c0_i32, %c0_i32_0 : i32, i32
  }
  func.func @transform_10(%arg0: i32) -> (i32, i32) {
    %c0_i32 = arith.constant 0 : i32
    %c0_i32_0 = arith.constant 0 : i32
    %c0_i32_1 = arith.constant 0 : i32
    return %c0_i32, %c0_i32_0 : i32, i32
  }
  func.func @transform_11(%arg0: i32) -> (i32, i32) {
    %c0_i32 = arith.constant 0 : i32
    %c0_i32_0 = arith.constant 0 : i32
    %c0_i32_1 = arith.constant 0 : i32
    return %c0_i32, %c0_i32_0 : i32, i32
  }
  func.func @transform_12(%arg0: i32) -> (i32, i32) {
    %c0_i32 = arith.constant 0 : i32
    %c0_i32_0 = arith.constant 0 : i32
    %c0_i32_1 = arith.constant 0 : i32
    return %c0_i32, %c0_i32_0 : i32, i32
  }
}

</mosaic_0001>

<bundles_post_ra>
// kernel: _dgcnn_forward.1
= control target key start
LH: loop header
LB: loop body
LE: loop exit
PB: predicated region body
PF: predicated region fallthrough
CT: control target
= control target key end

     0   :  { %vm3661_vm0 = vcmask 154624   ;;  %s3641_s0 = inlined_call_operand.vmem [shape: f32[9,19], index: 0, kind: input, shape index: {}]   ;;  %s3642_s1 = inlined_call_operand.vmem [shape: f32[19,9], index: 1, kind: input, shape index: {}]   ;;  %s3643_s2 = inlined_call_operand.vmem [shape: f32[19,4], index: 2, kind: input, shape index: {}]   ;;  %s3644_s3 = inlined_call_operand.vmem [shape: f32[2,32,128], index: 3, kind: input, shape index: {}]   ;;  %s3645_s4 = inlined_call_operand.vmem [shape: f32[9,128], index: 4, kind: input, shape index: {}]   ;;  %s3646_s5 = inlined_call_operand.vmem [shape: f32[19,128], index: 5, kind: input, shape index: {}]   ;;  %s3647_s6 = inlined_call_operand.vmem [shape: f32[128,16], index: 6, kind: input, shape index: {}]   ;;  %s3648_s7 = inlined_call_operand.vmem [shape: f32[1,16], index: 7, kind: input, shape index: {}]   ;;  %s3649_s8 = inlined_call_operand.vmem [shape: f32[80,32], index: 8, kind: input, shape index: {}]   ;;  %s3650_s9 = inlined_call_operand.vmem [shape: f32[1,32], index: 9, kind: input, shape index: {}]   ;;  %s3651_s10 = inlined_call_operand.vmem [shape: f32[32,8], index: 10, kind: input, shape index: {}]   ;;  %s3652_s11 = inlined_call_operand.vmem [shape: f32[1,8], index: 11, kind: input, shape index: {}]   ;;  %s3653_s12 = inlined_call_operand.hbm [shape: f32[2,8], index: 12, kind: output, shape index: {}]  }
   0x1   :  { %v47_v0 = vld [vmem:[%s3643_s2] sm:$0xff]  ;;  %v48_v1 = vld [vmem:[%s3643_s2 + $0x8] sm:$0xff] }
   0x2   :  { %v2711_v2 = vpack.c.bf16 %v48_v1, %v47_v0  ;;  %v3063_v3 = vld [vmem:[%s3641_s0] sm:$0xff] }
   0x3   :  { %17 = vsyncpa [#allocation4], 0  ;;  %v49_v4 = vld [vmem:[%s3643_s2 + $0x10] sm:$0x7]  ;;  %vm3659_vm1 = vcmask 1042432   ;;  %2433 = vmatprep.mubr.msk.f32.mxu0 %vm3661_vm0, %v3063_v3  ;;  %vm150_vm2 = vcmask 1043456  }
   0x4   :  { %2712 = vmatprep.subr.bf16.mxu0 %v2711_v2  ;;  %v3074_v5 = vld [vmem:[%s3641_s0 + $0x8] sm:$0x1]  ;;  %v50_v6 = vld [vmem:[%s3644_s3] sm:$0xf]  ;;  %vm143_vm3 = vcmask 31744   ;;  %v2978_v9 = vmov 0.0|0.0  }
   0x5   :  { %2714 = vmatpush3.bf16.msra.mxu0 %v2711_v2  ;;  %2436 = vmatprep.subr.msk.mxu1 %vm150_vm2, %v50_v6  ;;  %vm3656_vm4 = vmmov 0   ;;  %v2980_v10 = vmov 0.0   ;;  %v51_v11 = vld [vmem:[%s3644_s3] sm:$0xff]  ;;  %v52_v12 = vld [vmem:[%s3644_s3 + $0x8] sm:$0xff]  ;;  %v53_v13 = vld [vmem:[%s3644_s3 + $0x10] sm:$0xff]  ;;  %s2981_s21 = smov 96  }
   0x6   :  { %2431 = vmatprep.subr.msk.mxu0 %vm3659_vm1, %v49_v4  ;;  %2437 = vmatpush3.msk.msra.mxu1 %vm150_vm2, %v50_v6  ;;  %v3097_v14 = vpack.i.bf16 %v52_v12, %v51_v11  ;;  %v54_v15 = vld [vmem:[%s3644_s3 + $0x18] sm:$0xff]  ;;  %v3111_v17 = vld [vmem:[%s3645_s4] sm:$0xff]  ;;  %v142_v18 = vld [vmem:[%s3645_s4 + $0x8] sm:$0x1]  ;;  %vm3654_vm5 = vcmask 1040384   ;;  %vm2982_vm6 = vmmov 1  }
   0x7   :  { %2839 = vmatprep.subr.bf16.mxu1 %v2978_v9  ;;  %v3104_v16 = vpack.i.bf16 %v54_v15, %v53_v13  ;;  %vm3120_vm7 = vmpackc.low %vm3654_vm5, %vm2982_vm6  ;;  %v3131_v30 = vld [vmem:[%s3642_s1] sm:$0xff]  ;;  %vm231_vm8 = vcmask 72704   ;;  %v3136_v31 = vld [vmem:[%s3642_s1 + $0x8] sm:$0xff]  ;;  %vm3655_vm9 = vcmask 261120   ;;  %vm439_vm10 = vcmask 256000   ;;  %s2984_s20 = smov 32  }
   0x8   :  { %2853 = vrot.lane.b32.xlu0 %v3097_v14, %s2981_s21  ;;  %v3148_v36 = vld [vmem:[%s3642_s1 + $0x10] sm:$0x7]  ;;  %s2983_s1 = smov 64   ;;  %v3171_v44 = vld [vmem:[%s3646_s5] sm:$0xff]  ;;  %v3177_v48 = vld [vmem:[%s3646_s5 + $0x8] sm:$0xff]  ;;  %vm846_vm13 = vcmask 523520  }
   0x9   :  { %2432 = vmatpush3.msk.msra.mxu0 %vm3659_vm1, %v49_v4  ;;  %2863 = vrot.lane.b32.xlu1 %v3097_v14, %s2983_s1  ;;  %v327_v52 = vld [vmem:[%s3646_s5 + $0x10] sm:$0x7]  ;;  %v524_v6 = vld [vmem:[%s3645_s4 + $0x8] sm:$0x1]  ;;  %vm3660_vm15 = vcmask 149504   ;;  %vm1244_vm2 = vcmask 785920  }
   0xa   :  { %2434 = vmatmul.mubr.msk.f32.vlgmr.msra.gmra.mrb[0].mxu0 %vm3661_vm0, %v3074_v5  ;;  %2715 = vmatprep.subr.bf16.mxu0 %v2978_v9  ;;  %v1524_v26 = vld [vmem:[%s3646_s5 + $0x10] sm:$0x7]  ;;  %s2986_s23 = smov 16   ;;  %s2987_s27 = smov 48  }
   0xb   :  { %2445 = vmatprep.mubr.msk.f32.mxu0 %vm3656_vm4, %v2980_v10  ;;  %s2988_s15 = smov [#allocation3]  }
   0xc   :  { %2858 = vrot.lane.b32.xlu0 %v3104_v16, %s2981_s21  ;;  %s2223_s16 = sshll.u32 %s2988_s15, 4  ;;  %s2224_s16 = int_to_ptr.vmem [resolvable:$true] %s2223_s16 }
   0xd   :  { %2868 = vrot.lane.b32.xlu1 %v3104_v16, %s2983_s1  ;;  %p2959_p1 = scmp.lt.s32.totalorder %s2224_s16, %s2224_s16 }
  0x10   :  { %543 = vrot.lane.b32.xlu0 %v3111_v17, %s2981_s21 }
  0x11   :  { %545 = vrot.lane.b32.xlu1 %v524_v6, %s2981_s21 }
  0x14   :  { %2873 = vrot.lane.b32.xlu0 %v3097_v14, %s2984_s20 }
  0x15   :  { %2878 = vrot.lane.b32.xlu1 %v3104_v16, %s2984_s20 }
  0x18   :  { %733 = vrot.lane.b32.xlu0 %v3171_v44, %s2981_s21 }
  0x19   :  { %735 = vrot.lane.b32.xlu1 %v3177_v48, %s2981_s21 }
  0x1d   :  { %937 = vrot.lane.b32.xlu1 %v3111_v17, %s2983_s1 }
  0x7a   :  { %v2854_v24 = vpop.permute.xlu0 %2853 }
  0x7b   :  { %v2856_v27 = vunpack.i.h.bf16 %v2854_v24  ;;  %v2855_v28 = vunpack.i.l.bf16 %v2854_v24  ;;  %v2864_v57 = vpop.permute.xlu1 %2863 }
  0x7c   :  { %v2866_v58 = vunpack.i.h.bf16 %v2864_v57  ;;  %v2865_v59 = vunpack.i.l.bf16 %v2864_v57  ;;  %v2256_v57 = vld [vmem:[%s3644_s3 + $0x20] sm:$0xff] }
  0x7d   :  { %v2720_v32 = vpack.c.bf16 %v2856_v27, %v2855_v28 }
  0x7e   :  { %v2859_v33 = vpop.permute.xlu0 %2858  ;;  %v2729_v60 = vpack.c.bf16 %v2866_v58, %v2865_v59  ;;  %v2257_v58 = vld [vmem:[%s3644_s3 + $0x28] sm:$0xff] }
  0x7f   :  { %v2861_v34 = vunpack.i.h.bf16 %v2859_v33  ;;  %v2860_v35 = vunpack.i.l.bf16 %v2859_v33  ;;  %v2869_v62 = vpop.permute.xlu1 %2868 }
  0x80   :  { %v2871_v0 = vunpack.i.h.bf16 %v2869_v62  ;;  %v2870_v1 = vunpack.i.l.bf16 %v2869_v62  ;;  %v2751_v62 = vpack.c.bf16 %v2257_v58, %v2256_v57 }
  0x81   :  { %v2723_v37 = vpack.c.bf16 %v2861_v34, %v2860_v35 }
  0x82   :  { %v2733_v2 = vpack.c.bf16 %v2871_v0, %v2870_v1  ;;  %v544_v12 = vpop.permute.xlu0 %543  ;;  %v934_v0 = vld [vmem:[%s3645_s4 + $0x8] sm:$0x1] }
  0x83   :  { %v546_v11 = vpop.permute.xlu1 %545 }
  0xdd   :  { %v2435_v7 = vpop.f32.mrb[0].mxu0 }
  0xde   :  { %v132_v8 = vpop.f32.mrb[1].mxu0 }
  0xdf   :  { %2438 = vmatprep.mubr.msk.f32.mxu1 %vm143_vm3, %v132_v8 }
  0xe0   :  { %2439 = vmatmul.mubr.msk.f32.vlgmr.msra.gmra.mrb[0].mxu1 %vm143_vm3, %v2435_v7  ;;  %vm1653_vm3 = vcmask 1048320  }
  0xe1   :  { %2448 = vmatprep.mubr.msk.f32.mxu1 %vm3656_vm4, %v2980_v10 }
 0x1b3   :  { %v2440_v19 = vpop.f32.mrb[0].mxu1 }
 0x1b4   :  { %v226_v20 = vadd.f32 %v2440_v19, %v142_v18  ;;  %v220_v21 = vpop.f32.mrb[1].mxu1 }
 0x1b5   :  { %v221_v22 = vadd.f32 %v220_v21, %v3111_v17  ;;  %v2874_v21 = vpop.permute.xlu0 %2873 }
 0x1b6   :  { %2914 = vtanh.f32 %v226_v20  ;;  %v2875_v24 = vunpack.i.l.bf16 %v2874_v21 }
 0x1b7   :  { %2916 = vtanh.f32 %v221_v22  ;;  %v2879_v22 = vpop.permute.xlu1 %2878 }
 0x1b8   :  { %v2880_v27 = vunpack.i.l.bf16 %v2879_v22 }
 0x1c0   :  { %v2915_v23 = vpop.eup %2914 }
 0x1c1   :  { %v2917_v25 = vpop.eup %2916 }
 0x1c2   :  { %v2716_v29 = vpack.c.bf16 %v2915_v23, %v2917_v25  ;;  %v2876_v23 = vunpack.i.h.bf16 %v2874_v21  ;;  %v2881_v25 = vunpack.i.h.bf16 %v2879_v22 }
 0x1c4   :  { %2718 = vmatpush3.bf16.msk.msra.mxu0 %vm3120_vm7, %v2716_v29  ;;  %2840 = vmatpush3.bf16.msk.msra.mxu1 %vm3120_vm7, %v2716_v29  ;;  %v2742_v28 = vpack.c.bf16 %v2876_v23, %v2875_v24  ;;  %v2745_v29 = vpack.c.bf16 %v2881_v25, %v2880_v27  ;;  %v1111_v25 = vld [vmem:[%s3646_s5 + $0x10] sm:$0x7] }
 0x1c5   :  { %2719 = vmatprep.subr.bf16.mxu0 %v2978_v9 }
 0x1c7   :  { %2446 = vmatmul.mubr.msk.f32.vlgmr.msra.gmra.mrb[2].mxu0 %vm231_vm8, %v3131_v30  ;;  %2449 = vmatmul.mubr.msk.f32.vlgmr.msra.gmra.mrb[2].mxu1 %vm231_vm8, %v3136_v31 }
 0x1c8   :  { %2451 = vmatprep.mubr.msk.f32.mxu1 %vm3656_vm4, %v2980_v10  ;;  %2721 = vmatpush3.bf16.msra.mxu0 %v2720_v32  ;;  %v717_v32 = vld [vmem:[%s3646_s5 + $0x10] sm:$0x7] }
 0x1c9   :  { %2722 = vmatprep.subr.bf16.mxu0 %v2978_v9  ;;  %2462 = vmatprep.mubr.msk.f32.mxu0 %vm3656_vm4, %v2980_v10 }
 0x1ca   :  { %737 = vrot.lane.b32.xlu0 %v717_v32, %s2981_s21 }
 0x1cb   :  { %2452 = vmatmul.mubr.msk.f32.gmra.mrb[4].mxu1 %vm231_vm8, %v3148_v36 }
 0x1cc   :  { %2724 = vmatpush3.bf16.msra.mxu0 %v2723_v37  ;;  %2477 = vmatprep.mubr.msk.f32.mxu1 %vm3661_vm0, %v3063_v3 }
 0x1cd   :  { %2730 = vmatprep.subr.bf16.mxu0 %v2729_v60 }
 0x1ce   :  { %939 = vrot.lane.b32.xlu0 %v934_v0, %s2983_s1  ;;  %v1331_v0 = vld [vmem:[%s3645_s4 + $0x8] sm:$0x1] }
 0x29a   :  { %v311_v38 = vpop.f32.mrb[2].mxu0  ;;  %v316_v39 = vpop.f32.mrb[2].mxu1 }
 0x29b   :  { %v2447_v40 = vpop.f32.mrb[3].mxu0  ;;  %2463 = vmatmul.mubr.msk.f32.vlgmr.msra.gmra.mrb[4].mxu0 %vm3655_vm9, %v311_v38  ;;  %v2450_v41 = vpop.f32.mrb[3].mxu1 }
 0x29c   :  { %2465 = vmatprep.mubr.msk.f32.mxu0 %vm3656_vm4, %v2980_v10  ;;  %2732 = vmatpush3.bf16.msra.mxu0 %v2729_v60  ;;  %v734_v40 = vpop.permute.xlu0 %733  ;;  %v2258_v60 = vld [vmem:[%s3644_s3 + $0x30] sm:$0xff] }
 0x29d   :  { %2734 = vmatprep.subr.bf16.mxu0 %v2733_v2 }
 0x29e   :  { %v321_v42 = vpop.f32.mrb[4].mxu1 }
 0x29f   :  { %2466 = vmatmul.mubr.msk.f32.gmra.mrb[6].mxu0 %vm3655_vm9, %v316_v39  ;;  %v2453_v43 = vpop.f32.mrb[5].mxu1 }
 0x2a0   :  { %2468 = vmatprep.mubr.msk.f32.mxu0 %vm3656_vm4, %v2980_v10  ;;  %2736 = vmatpush3.bf16.msra.mxu0 %v2733_v2 }
 0x2a1   :  { %2741 = vmatprep.subr.bf16.mxu0 %v2978_v9 }
 0x2a3   :  { %2469 = vmatmul.mubr.msk.f32.gmra.mrb[8].mxu0 %vm3655_vm9, %v321_v42 }
 0x36e   :  { %v420_v45 = vpop.f32.mrb[4].mxu0 }
 0x36f   :  { %v421_v46 = vadd.f32 %v420_v45, %v3171_v44  ;;  %v2464_v47 = vpop.f32.mrb[5].mxu0  ;;  %v736_v45 = vpop.permute.xlu1 %735 }
 0x371   :  { %2918 = vtanh.f32 %v421_v46 }
 0x372   :  { %v425_v49 = vpop.f32.mrb[6].mxu0 }
 0x373   :  { %v426_v50 = vadd.f32 %v425_v49, %v3177_v48  ;;  %v2467_v51 = vpop.f32.mrb[7].mxu0 }
 0x375   :  { %2920 = vtanh.f32 %v426_v50  ;;  %v738_v50 = vpop.permute.xlu0 %737 }
 0x376   :  { %v430_v53 = vpop.f32.mrb[8].mxu0 }
 0x377   :  { %v431_v54 = vadd.f32 %v430_v53, %v327_v52  ;;  %v2470_v55 = vpop.f32.mrb[9].mxu0 }
 0x379   :  { %2922 = vtanh.f32 %v431_v54 }
 0x37b   :  { %v2919_v56 = vpop.eup %2918 }
 0x37c   :  { %437 = vst.msk [vmem:[#allocation2] sm:$0xff] %vm3655_vm9, %v2919_v56 }
 0x37f   :  { %v2921_v61 = vpop.eup %2920 }
 0x380   :  { %438 = vst.msk [vmem:[#allocation2 + $0x8] sm:$0xff] %vm3655_vm9, %v2921_v61  ;;  %v2725_v63 = vpack.c.bf16 %v2921_v61, %v2919_v56  ;;  %v2259_v61 = vld [vmem:[%s3644_s3 + $0x38] sm:$0xff] }
 0x381   :  { %v3275_v6 = vpack.i.bf16 %v2259_v61, %v2258_v60 }
 0x382   :  { %2726 = vmatprep.subr.bf16.mxu1 %v2725_v63 }
 0x383   :  { %v2923_v4 = vpop.eup %2922  ;;  %2728 = vmatpush3.bf16.msra.mxu1 %v2725_v63  ;;  %v2755_v63 = vpack.c.bf16 %v2259_v61, %v2258_v60  ;;  %2888 = vrot.lane.b32.xlu0 %v3275_v6, %s2981_s21 }
 0x384   :  { %2475 = vmatprep.subr.msk.mxu1 %vm3659_vm1, %v2923_v4  ;;  %440 = vst.msk [vmem:[#allocation2 + $0x10] sm:$0x7] %vm439_vm10, %v2923_v4 }
 0x387   :  { %2476 = vmatpush3.msk.msra.mxu1 %vm3659_vm1, %v2923_v4  ;;  %v2882_v4 = vpack.i.bf16 %v2257_v58, %v2256_v57  ;;  %1133 = vrot.lane.b32.xlu0 %v3177_v48, %s2983_s1 }
 0x388   :  { %2478 = vmatmul.mubr.msk.f32.vlgmr.msra.gmra.mrb[6].mxu1 %vm3661_vm0, %v3074_v5  ;;  %2737 = vmatprep.subr.bf16.mxu1 %v2978_v9 }
 0x389   :  { %2495 = vmatprep.mubr.msk.f32.mxu1 %vm3656_vm4, %v2980_v10  ;;  %2883 = vrot.lane.b32.xlu1 %v2882_v4, %s2981_s21 }
 0x38b   :  { %2893 = vrot.lane.b32.xlu0 %v2882_v4, %s2983_s1 }
 0x38d   :  { %1131 = vrot.lane.b32.xlu1 %v3171_v44, %s2983_s1 }
 0x38f   :  { %1350 = vrot.lane.b32.xlu0 %v3111_v17, %s2984_s20 }
 0x391   :  { %1135 = vrot.lane.b32.xlu1 %v1111_v25, %s2983_s1 }
 0x393   :  { %2903 = vrot.lane.b32.xlu0 %v2882_v4, %s2984_s20 }
 0x395   :  { %2898 = vrot.lane.b32.xlu1 %v3275_v6, %s2983_s1 }
 0x397   :  { %1540 = vrot.lane.b32.xlu0 %v3171_v44, %s2984_s20 }
 0x399   :  { %1352 = vrot.lane.b32.xlu1 %v1331_v0, %s2984_s20  ;;  %v1885_v0 = vld [vmem:[%s3647_s6 + $0x68] sm:$0xff] }
 0x39b   :  { %1544 = vrot.lane.b32.xlu0 %v1524_v26, %s2984_s20 }
 0x39d   :  { %2908 = vrot.lane.b32.xlu1 %v3275_v6, %s2984_s20 }
 0x3a1   :  { %1542 = vrot.lane.b32.xlu1 %v3177_v48, %s2984_s20 }
 0x45b   :  { %v2479_v7 = vpop.f32.mrb[6].mxu1 }
 0x45c   :  { %v514_v8 = vpop.f32.mrb[7].mxu1 }
 0x45d   :  { %2488 = vmatprep.mubr.msk.f32.mxu0 %vm3655_vm9, %v514_v8  ;;  %v938_v8 = vpop.permute.xlu1 %937 }
 0x45e   :  { %2489 = vmatmul.mubr.msk.f32.vlgmr.msra.gmra.mrb[10].mxu0 %vm3655_vm9, %v2479_v7  ;;  %v940_v7 = vpop.permute.xlu0 %939 }
 0x45f   :  { %2512 = vmatprep.mubr.msk.f32.mxu0 %vm3656_vm4, %v2980_v10  ;;  %2743 = vmatpush3.bf16.msra.mxu0 %v2742_v28 }
 0x460   :  { %2744 = vmatprep.subr.bf16.mxu0 %v2978_v9 }
 0x463   :  { %2746 = vmatpush3.bf16.msra.mxu0 %v2745_v29 }
 0x464   :  { %2759 = vmatprep.subr.bf16.mxu0 %v2978_v9 }
 0x531   :  { %v2490_v13 = vpop.f32.mrb[10].mxu0 }
 0x532   :  { %v627_v15 = vadd.f32 %v2490_v13, %v546_v11  ;;  %v621_v18 = vpop.f32.mrb[11].mxu0 }
 0x533   :  { %v622_v19 = vadd.f32 %v621_v18, %v544_v12 }
 0x534   :  { %2924 = vtanh.f32 %v627_v15 }
 0x535   :  { %2926 = vtanh.f32 %v622_v19 }
 0x53e   :  { %v2925_v14 = vpop.eup %2924 }
 0x53f   :  { %v2927_v20 = vpop.eup %2926 }
 0x540   :  { %v2738_v16 = vpack.c.bf16 %v2925_v14, %v2927_v20  ;;  %v2884_v20 = vpop.permute.xlu1 %2883 }
 0x541   :  { %v2886_v17 = vunpack.i.h.bf16 %v2884_v20  ;;  %v2885_v21 = vunpack.i.l.bf16 %v2884_v20 }
 0x542   :  { %2740 = vmatpush3.bf16.msk.msra.mxu1 %vm3120_vm7, %v2738_v16  ;;  %v2889_v16 = vpop.permute.xlu0 %2888 }
 0x543   :  { %v2891_v22 = vunpack.i.h.bf16 %v2889_v16  ;;  %v2890_v44 = vunpack.i.l.bf16 %v2889_v16  ;;  %v2764_v23 = vpack.c.bf16 %v2886_v17, %v2885_v21 }
 0x545   :  { %2496 = vmatmul.mubr.msk.f32.vlgmr.msra.gmra.mrb[8].mxu1 %vm231_vm8, %v3131_v30  ;;  %v2767_v24 = vpack.c.bf16 %v2891_v22, %v2890_v44 }
 0x546   :  { %2498 = vmatprep.mubr.msk.f32.mxu1 %vm3656_vm4, %v2980_v10 }
 0x549   :  { %2499 = vmatmul.mubr.msk.f32.gmra.mrb[10].mxu1 %vm231_vm8, %v3136_v31 }
 0x54a   :  { %2501 = vmatprep.mubr.msk.f32.mxu1 %vm3656_vm4, %v2980_v10 }
 0x54d   :  { %2502 = vmatmul.mubr.msk.f32.gmra.mrb[12].mxu1 %vm231_vm8, %v3148_v36 }
 0x54e   :  { %2527 = vmatprep.mubr.msk.f32.mxu1 %vm3661_vm0, %v3063_v3 }
 0x618   :  { %v701_v33 = vpop.f32.mrb[8].mxu1 }
 0x619   :  { %v2497_v34 = vpop.f32.mrb[9].mxu1  ;;  %2513 = vmatmul.mubr.msk.f32.vlgmr.msra.gmra.mrb[12].mxu0 %vm3655_vm9, %v701_v33 }
 0x61a   :  { %2515 = vmatprep.mubr.msk.f32.mxu0 %vm3656_vm4, %v2980_v10  ;;  %v1132_v34 = vpop.permute.xlu1 %1131 }
 0x61c   :  { %v706_v35 = vpop.f32.mrb[10].mxu1 }
 0x61d   :  { %v2500_v37 = vpop.f32.mrb[11].mxu1  ;;  %2516 = vmatmul.mubr.msk.f32.gmra.mrb[14].mxu0 %vm3655_vm9, %v706_v35  ;;  %v1134_v35 = vpop.permute.xlu0 %1133 }
 0x61e   :  { %2518 = vmatprep.mubr.msk.f32.mxu0 %vm3656_vm4, %v2980_v10  ;;  %v1136_v37 = vpop.permute.xlu1 %1135 }
 0x620   :  { %v711_v38 = vpop.f32.mrb[12].mxu1 }
 0x621   :  { %v2503_v39 = vpop.f32.mrb[13].mxu1  ;;  %2519 = vmatmul.mubr.msk.f32.gmra.mrb[16].mxu0 %vm3655_vm9, %v711_v38  ;;  %v2894_v38 = vpop.permute.xlu0 %2893 }
 0x622   :  { %2545 = vmatprep.mubr.msk.f32.mxu0 %vm3656_vm4, %v2980_v10  ;;  %v2899_v39 = vpop.permute.xlu1 %2898 }
 0x625   :  { %v1351_v4 = vpop.permute.xlu0 %1350 }
 0x6ec   :  { %v817_v41 = vpop.f32.mrb[12].mxu0 }
 0x6ed   :  { %v2514_v42 = vpop.f32.mrb[13].mxu0  ;;  %v818_v43 = vadd.f32 %v817_v41, %v734_v40  ;;  %v2896_v40 = vunpack.i.h.bf16 %v2894_v38  ;;  %v2895_v41 = vunpack.i.l.bf16 %v2894_v38 }
 0x6ee   :  { %v2901_v42 = vunpack.i.h.bf16 %v2899_v39 }
 0x6ef   :  { %2928 = vtanh.f32 %v818_v43  ;;  %v2900_v43 = vunpack.i.l.bf16 %v2899_v39 }
 0x6f0   :  { %v822_v46 = vpop.f32.mrb[14].mxu0 }
 0x6f1   :  { %v823_v47 = vadd.f32 %v822_v46, %v736_v45  ;;  %v2517_v49 = vpop.f32.mrb[15].mxu0  ;;  %v2773_v45 = vpack.c.bf16 %v2896_v40, %v2895_v41  ;;  %v2777_v46 = vpack.c.bf16 %v2901_v42, %v2900_v43  ;;  %v1874_v43 = vld [vmem:[%s3647_s6 + $0x10] sm:$0xff] }
 0x6f3   :  { %2930 = vtanh.f32 %v823_v47 }
 0x6f4   :  { %v827_v51 = vpop.f32.mrb[16].mxu0 }
 0x6f5   :  { %v828_v52 = vadd.f32 %v827_v51, %v738_v50  ;;  %v2520_v53 = vpop.f32.mrb[17].mxu0 }
 0x6f7   :  { %2932 = vtanh.f32 %v828_v52 }
 0x6f9   :  { %v3240_v54 = vpop.eup %2928 }
 0x6fd   :  { %v3242_v55 = vpop.eup %2930 }
 0x6fe   :  { %v2747_v56 = vpack.c.bf16 %v3242_v55, %v3240_v54 }
 0x700   :  { %2748 = vmatprep.subr.bf16.mxu1 %v2747_v56 }
 0x701   :  { %v3252_v59 = vpop.eup %2932  ;;  %2750 = vmatpush3.bf16.msra.mxu1 %v2747_v56 }
 0x702   :  { %2525 = vmatprep.subr.msk.mxu1 %vm3659_vm1, %v3252_v59 }
 0x705   :  { %2526 = vmatpush3.msk.msra.mxu1 %vm3659_vm1, %v3252_v59 }
 0x706   :  { %2528 = vmatmul.mubr.msk.f32.vlgmr.msra.gmra.mrb[14].mxu1 %vm3661_vm0, %v3074_v5  ;;  %2752 = vmatprep.subr.bf16.mxu1 %v2751_v62 }
 0x707   :  { %2754 = vmatpush3.bf16.msra.mxu1 %v2751_v62 }
 0x708   :  { %2756 = vmatprep.subr.bf16.mxu1 %v2755_v63 }
 0x70b   :  { %2758 = vmatpush3.bf16.msra.mxu1 %v2755_v63 }
 0x70c   :  { %2763 = vmatprep.subr.bf16.mxu1 %v2978_v9 }
 0x7d9   :  { %v2529_v1 = vpop.f32.mrb[14].mxu1 }
 0x7da   :  { %v924_v2 = vpop.f32.mrb[15].mxu1 }
 0x7db   :  { %2538 = vmatprep.mubr.msk.f32.mxu1 %vm3655_vm9, %v924_v2 }
 0x7dc   :  { %2539 = vmatmul.mubr.msk.f32.vlgmr.msra.gmra.mrb[16].mxu1 %vm3655_vm9, %v2529_v1 }
 0x7dd   :  { %2562 = vmatprep.mubr.msk.f32.mxu1 %vm3656_vm4, %v2980_v10  ;;  %2765 = vmatpush3.bf16.msra.mxu1 %v2764_v23 }
 0x7de   :  { %2766 = vmatprep.subr.bf16.mxu1 %v2978_v9 }
 0x7e1   :  { %2768 = vmatpush3.bf16.msra.mxu1 %v2767_v24  ;;  %v2985_v24 = vmov 0  }
 0x7e2   :  { %2774 = vmatprep.subr.bf16.mxu1 %v2773_v45  ;;  %2913 = vset.pattern.permute.xlu0 %v2985_v24 }
 0x7e3   :  { %2912 = vset.pattern.permute.xlu1 %v2985_v24 }
 0x8af   :  { %v2540_v11 = vpop.f32.mrb[16].mxu1 }
 0x8b0   :  { %v1021_v12 = vadd.f32 %v2540_v11, %v940_v7  ;;  %v1015_v13 = vpop.f32.mrb[17].mxu1  ;;  %v2904_v7 = vpop.permute.xlu0 %2903 }
 0x8b1   :  { %v1016_v15 = vadd.f32 %v1015_v13, %v938_v8  ;;  %v2906_v11 = vunpack.i.h.bf16 %v2904_v7 }
 0x8b2   :  { %2934 = vtanh.f32 %v1021_v12  ;;  %v2905_v12 = vunpack.i.l.bf16 %v2904_v7  ;;  %v1661_v7 = vlaneseq }
 0x8b3   :  { %2936 = vtanh.f32 %v1016_v15 }
 0x8b4   :  { %v2786_v15 = vpack.c.bf16 %v2906_v11, %v2905_v12  ;;  %v1541_v25 = vpop.permute.xlu0 %1540  ;;  %v3450_v11 = vand.u32 127, %v1661_v7 }
 0x8b6   :  { %vm3658_vm6 = vcmp.ge.s32.totalorder %v3450_v11, 7  ;;  %vm1707_vm10 = vcmp.lt.s32.totalorder %v3450_v11, 7 }
 0x8bc   :  { %v2935_v18 = vpop.eup %2934 }
 0x8bd   :  { %v2937_v19 = vpop.eup %2936 }
 0x8be   :  { %v2760_v14 = vpack.c.bf16 %v2935_v18, %v2937_v19 }
 0x8c0   :  { %2762 = vmatpush3.bf16.msk.msra.mxu0 %vm3120_vm7, %v2760_v14 }
 0x8c3   :  { %2546 = vmatmul.mubr.msk.f32.vlgmr.msra.gmra.mrb[18].mxu0 %vm231_vm8, %v3131_v30 }
 0x8c4   :  { %2548 = vmatprep.mubr.msk.f32.mxu0 %vm3656_vm4, %v2980_v10 }
 0x8c7   :  { %2549 = vmatmul.mubr.msk.f32.gmra.mrb[20].mxu0 %vm231_vm8, %v3136_v31 }
 0x8c8   :  { %2551 = vmatprep.mubr.msk.f32.mxu0 %vm3656_vm4, %v2980_v10 }
 0x8cb   :  { %2552 = vmatmul.mubr.msk.f32.gmra.mrb[22].mxu0 %vm231_vm8, %v3148_v36 }
 0x8cc   :  { %2577 = vmatprep.mubr.msk.f32.mxu0 %vm3661_vm0, %v3063_v3 }
 0x996   :  { %v1095_v27 = vpop.f32.mrb[18].mxu0 }
 0x997   :  { %2563 = vmatmul.mubr.msk.f32.vlgmr.msra.gmra.mrb[18].mxu1 %vm3655_vm9, %v1095_v27  ;;  %v2547_v28 = vpop.f32.mrb[19].mxu0 }
 0x998   :  { %2565 = vmatprep.mubr.msk.f32.mxu1 %vm3656_vm4, %v2980_v10  ;;  %2776 = vmatpush3.bf16.msra.mxu1 %v2773_v45 }
 0x999   :  { %2778 = vmatprep.subr.bf16.mxu1 %v2777_v46 }
 0x99a   :  { %v1100_v29 = vpop.f32.mrb[20].mxu0 }
 0x99b   :  { %2566 = vmatmul.mubr.msk.f32.gmra.mrb[20].mxu1 %vm3655_vm9, %v1100_v29  ;;  %v2550_v3 = vpop.f32.mrb[21].mxu0 }
 0x99c   :  { %2568 = vmatprep.mubr.msk.f32.mxu1 %vm3656_vm4, %v2980_v10  ;;  %2780 = vmatpush3.bf16.msra.mxu1 %v2777_v46  ;;  %v1875_v46 = vld [vmem:[%s3647_s6 + $0x18] sm:$0xff] }
 0x99d   :  { %2785 = vmatprep.subr.bf16.mxu1 %v2978_v9 }
 0x99e   :  { %v1105_v32 = vpop.f32.mrb[22].mxu0 }
 0x99f   :  { %2569 = vmatmul.mubr.msk.f32.gmra.mrb[22].mxu1 %vm3655_vm9, %v1105_v32  ;;  %v2553_v33 = vpop.f32.mrb[23].mxu0 }
 0xa6a   :  { %v1215_v47 = vpop.f32.mrb[18].mxu1 }
 0xa6b   :  { %v2564_v49 = vpop.f32.mrb[19].mxu1  ;;  %v1216_v50 = vadd.f32 %v1215_v47, %v1132_v34  ;;  %v1876_v47 = vld [vmem:[%s3647_s6 + $0x20] sm:$0xff] }
 0xa6c   :  { %v1877_v49 = vld [vmem:[%s3647_s6 + $0x28] sm:$0xff] }
 0xa6d   :  { %2938 = vtanh.f32 %v1216_v50  ;;  %v2801_v50 = vpack.c.bf16 %v1877_v49, %v1876_v47 }
 0xa6e   :  { %v1220_v51 = vpop.f32.mrb[20].mxu1 }
 0xa6f   :  { %v1221_v52 = vadd.f32 %v1220_v51, %v1134_v35  ;;  %v2567_v53 = vpop.f32.mrb[21].mxu1  ;;  %v1545_v35 = vpop.permute.xlu0 %1544  ;;  %v1878_v51 = vld [vmem:[%s3647_s6 + $0x30] sm:$0xff] }
 0xa71   :  { %2940 = vtanh.f32 %v1221_v52  ;;  %v1879_v52 = vld [vmem:[%s3647_s6 + $0x38] sm:$0xff] }
 0xa72   :  { %v1225_v56 = vpop.f32.mrb[22].mxu1  ;;  %v2804_v53 = vpack.c.bf16 %v1879_v52, %v1878_v51 }
 0xa73   :  { %v1226_v57 = vadd.f32 %v1225_v56, %v1136_v37  ;;  %v2570_v58 = vpop.f32.mrb[23].mxu1  ;;  %v1880_v56 = vld [vmem:[%s3647_s6 + $0x40] sm:$0xff] }
 0xa75   :  { %2942 = vtanh.f32 %v1226_v57  ;;  %v1881_v57 = vld [vmem:[%s3647_s6 + $0x48] sm:$0xff] }
 0xa76   :  { %v2807_v58 = vpack.c.bf16 %v1881_v57, %v1880_v56 }
 0xa77   :  { %v3319_v60 = vpop.eup %2938 }
 0xa7b   :  { %v3321_v61 = vpop.eup %2940 }
 0xa7c   :  { %v2769_v62 = vpack.c.bf16 %v3321_v61, %v3319_v60 }
 0xa7e   :  { %2770 = vmatprep.subr.bf16.mxu0 %v2769_v62 }
 0xa7f   :  { %v3325_v63 = vpop.eup %2942  ;;  %2772 = vmatpush3.bf16.msra.mxu0 %v2769_v62 }
 0xa80   :  { %2575 = vmatprep.subr.msk.mxu0 %vm3659_vm1, %v3325_v63 }
 0xa83   :  { %2576 = vmatpush3.msk.msra.mxu0 %vm3659_vm1, %v3325_v63 }
 0xa84   :  { %2578 = vmatmul.mubr.msk.f32.vlgmr.msra.gmra.mrb[24].mxu0 %vm3661_vm0, %v3074_v5  ;;  %2781 = vmatprep.subr.bf16.mxu0 %v2978_v9  ;;  %v1353_v5 = vpop.permute.xlu1 %1352 }
 0xa85   :  { %2595 = vmatprep.mubr.msk.f32.mxu0 %vm3656_vm4, %v2980_v10 }
 0xa88   :  { %v2909_v8 = vpop.permute.xlu1 %2908 }
 0xa89   :  { %v2911_v13 = vunpack.i.h.bf16 %v2909_v8  ;;  %v2910_v6 = vunpack.i.l.bf16 %v2909_v8  ;;  %v3448_v8 = vshrl.u32 %v1661_v7, 7 }
 0xa8b   :  { %v2789_v18 = vpack.c.bf16 %v2911_v13, %v2910_v6  ;;  %v3453_v12 = vadd.s32 8, %v3448_v8  ;;  %vm1667_vm11 = vcmp.eq.s32.totalorder %v3448_v8, %v3450_v11  ;;  %v3462_v6 = vadd.s32 16, %v3448_v8 }
 0xa8c   :  { %v1543_v3 = vpop.permute.xlu1 %1542  ;;  %vm1737_vm5 = vcmp.lt.s32.totalorder %v3448_v8, %v3450_v11 }
 0xa8d   :  { %vm1668_vm12 = vcmp.eq.s32.totalorder %v3453_v12, %v3450_v11  ;;  %vm1669_vm14 = vcmp.eq.s32.totalorder %v3462_v6, %v3450_v11 }
 0xb57   :  { %v2579_v1 = vpop.f32.mrb[24].mxu0 }
 0xb58   :  { %v1321_v2 = vpop.f32.mrb[25].mxu0 }
 0xb59   :  { %2588 = vmatprep.mubr.msk.f32.mxu1 %vm3655_vm9, %v1321_v2  ;;  %v1886_v2 = vld [vmem:[%s3647_s6 + $0x70] sm:$0xff] }
 0xb5a   :  { %2589 = vmatmul.mubr.msk.f32.vlgmr.msra.gmra.mrb[24].mxu1 %vm3655_vm9, %v2579_v1 }
 0xb5b   :  { %2612 = vmatprep.mubr.msk.f32.mxu1 %vm3656_vm4, %v2980_v10  ;;  %2787 = vmatpush3.bf16.msra.mxu1 %v2786_v15 }
 0xb5c   :  { %2788 = vmatprep.subr.bf16.mxu1 %v2978_v9 }
 0xb5f   :  { %2790 = vmatpush3.bf16.msra.mxu1 %v2789_v18 }
 0xb60   :  { %2794 = vmatprep.subr.bf16.mxu1 %v2978_v9 }
 0xc2d   :  { %v2590_v48 = vpop.f32.mrb[24].mxu1 }
 0xc2e   :  { %v1434_v19 = vadd.f32 %v2590_v48, %v1353_v5  ;;  %v1428_v14 = vpop.f32.mrb[25].mxu1  ;;  %v1887_v5 = vld [vmem:[%s3647_s6 + $0x78] sm:$0xff] }
 0xc2f   :  { %v1429_v20 = vadd.f32 %v1428_v14, %v1351_v4  ;;  %v2816_v4 = vpack.c.bf16 %v1887_v5, %v1886_v2 }
 0xc30   :  { %2944 = vtanh.f32 %v1434_v19 }
 0xc31   :  { %2946 = vtanh.f32 %v1429_v20 }
 0xc3a   :  { %v2945_v16 = vpop.eup %2944 }
 0xc3b   :  { %v2947_v17 = vpop.eup %2946 }
 0xc3c   :  { %v2782_v21 = vpack.c.bf16 %v2945_v16, %v2947_v17 }
 0xc3e   :  { %2784 = vmatpush3.bf16.msk.msra.mxu0 %vm3120_vm7, %v2782_v21  ;;  %vm1722_vm7 = vcmp.lt.s32.totalorder %v3450_v11, 19 }
 0xc3f   :  { %2791 = vmatprep.subr.bf16.mxu0 %v2978_v9 }
 0xc41   :  { %2596 = vmatmul.mubr.msk.f32.vlgmr.msra.gmra.mrb[26].mxu0 %vm231_vm8, %v3131_v30 }
 0xc42   :  { %2598 = vmatprep.mubr.msk.f32.mxu0 %vm3656_vm4, %v2980_v10 }
 0xc45   :  { %2599 = vmatmul.mubr.msk.f32.gmra.mrb[28].mxu0 %vm231_vm8, %v3136_v31 }
 0xc46   :  { %2601 = vmatprep.mubr.msk.f32.mxu0 %vm3656_vm4, %v2980_v10 }
 0xc49   :  { %2602 = vmatmul.mubr.msk.f32.gmra.mrb[30].mxu0 %vm231_vm8, %v3148_v36  ;;  %vm1700_vm8 = vcmp.lt.s32.totalorder %v3448_v8, 7 }
 0xc4a   :  { %2627 = vmatprep.mubr.msk.f32.mxu0 %vm3656_vm4, %v2980_v10 }
 0xd14   :  { %v1508_v30 = vpop.f32.mrb[26].mxu0 }
 0xd15   :  { %2613 = vmatmul.mubr.msk.f32.vlgmr.msra.gmra.mrb[26].mxu1 %vm3655_vm9, %v1508_v30  ;;  %v2597_v22 = vpop.f32.mrb[27].mxu0 }
 0xd16   :  { %2615 = vmatprep.mubr.msk.f32.mxu1 %vm3656_vm4, %v2980_v10 }
 0xd18   :  { %v1513_v31 = vpop.f32.mrb[28].mxu0 }
 0xd19   :  { %2616 = vmatmul.mubr.msk.f32.gmra.mrb[28].mxu1 %vm3655_vm9, %v1513_v31  ;;  %v2600_v36 = vpop.f32.mrb[29].mxu0 }
 0xd1a   :  { %2618 = vmatprep.mubr.msk.f32.mxu1 %vm3656_vm4, %v2980_v10 }
 0xd1c   :  { %v1518_v44 = vpop.f32.mrb[30].mxu0 }
 0xd1d   :  { %2619 = vmatmul.mubr.msk.f32.gmra.mrb[30].mxu1 %vm3655_vm9, %v1518_v44  ;;  %v2603_v23 = vpop.f32.mrb[31].mxu0 }
 0xd1e   :  { %2668 = vmatprep.mubr.msk.f32.mxu1 %vm3656_vm4, %v2980_v10 }
 0xde8   :  { %v1624_v27 = vpop.f32.mrb[26].mxu1 }
 0xde9   :  { %v2614_v28 = vpop.f32.mrb[27].mxu1  ;;  %v1625_v29 = vadd.f32 %v1624_v27, %v1541_v25  ;;  %v3667_v27 = vmov 0 }
 0xdeb   :  { %2948 = vtanh.f32 %v1625_v29 }
 0xdec   :  { %v1629_v32 = vpop.f32.mrb[28].mxu1 }
 0xded   :  { %v1630_v33 = vadd.f32 %v1629_v32, %v1543_v3  ;;  %v2617_v34 = vpop.f32.mrb[29].mxu1  ;;  %v3669_v3 = vmov 0 }
 0xdef   :  { %2950 = vtanh.f32 %v1630_v33  ;;  %v3671_v33 = vmov 0 }
 0xdf0   :  { %v1634_v37 = vpop.f32.mrb[30].mxu1 }
 0xdf1   :  { %v1635_v38 = vadd.f32 %v1634_v37, %v1545_v35  ;;  %v2620_v39 = vpop.f32.mrb[31].mxu1  ;;  %v3673_v35 = vmov 0 }
 0xdf3   :  { %2952 = vtanh.f32 %v1635_v38 }
 0xdf5   :  { %v2949_v40 = vpop.eup %2948 }
 0xdf6   :  { %1671 = vperm.xlu1 %2912, %v2949_v40  }
 0xdf9   :  { %v2951_v41 = vpop.eup %2950 }
 0xdfa   :  { %1675 = vperm.xlu0 %2913, %v2951_v41  }
 0xdfd   :  { %v2953_v42 = vpop.eup %2952 }
 0xdfe   :  { %839 = vrot.lane.b32.xlu0 %v3242_v55, %s2984_s20  ;;  %1679 = vperm.xlu1 %2912, %v2953_v42   ;;  %v1872_v55 = vld [vmem:[%s3647_s6] sm:$0xff] }
 0xe02   :  { %1237 = vrot.lane.b32.xlu0 %v3321_v61, %s2983_s1  ;;  %837 = vrot.lane.b32.xlu1 %v3240_v54, %s2984_s20  ;;  %v1873_v54 = vld [vmem:[%s3647_s6 + $0x8] sm:$0xff]  ;;  %v1883_v61 = vld [vmem:[%s3647_s6 + $0x58] sm:$0xff] }
 0xe03   :  { %v2795_v45 = vpack.c.bf16 %v1873_v54, %v1872_v55 }
 0xe05   :  { %2796 = vmatpush3.bf16.msra.mxu1 %v2795_v45 }
 0xe06   :  { %1646 = vrot.lane.b32.xlu0 %v2951_v41, %s2981_s21  ;;  %1235 = vrot.lane.b32.xlu1 %v3319_v60, %s2983_s1  ;;  %v1882_v60 = vld [vmem:[%s3647_s6 + $0x50] sm:$0xff] }
 0xe07   :  { %2797 = vmatprep.subr.bf16.mxu1 %v2978_v9  ;;  %v2810_v62 = vpack.c.bf16 %v1883_v61, %v1882_v60 }
 0xe0a   :  { %1239 = vrot.lane.b32.xlu0 %v3325_v63, %s2983_s1  ;;  %1644 = vrot.lane.b32.xlu1 %v2949_v40, %s2981_s21  ;;  %v1884_v63 = vld [vmem:[%s3647_s6 + $0x60] sm:$0xff] }
 0xe0b   :  { %v2813_v1 = vpack.c.bf16 %v1885_v0, %v1884_v63  ;;  %v1766_v63 = vcvt.s32.f32 %v3453_v12 }
 0xe0e   :  { %841 = vrot.lane.b32.xlu1 %v3252_v59, %s2984_s20  ;;  %v2798_v59 = vpack.c.bf16 %v1875_v46, %v1874_v43 }
 0xe10   :  { %2799 = vmatpush3.bf16.msra.mxu1 %v2798_v59 }
 0xe11   :  { %2800 = vmatprep.subr.bf16.mxu1 %v2978_v9 }
 0xe12   :  { %1648 = vrot.lane.b32.xlu1 %v2953_v42, %s2981_s21 }
 0xe14   :  { %2802 = vmatpush3.bf16.msra.mxu1 %v2801_v50 }
 0xe15   :  { %2803 = vmatprep.subr.bf16.mxu1 %v2978_v9 }
 0xe18   :  { %2805 = vmatpush3.bf16.msra.mxu1 %v2804_v53 }
 0xe19   :  { %2806 = vmatprep.subr.bf16.mxu1 %v2978_v9 }
 0xe1c   :  { %2808 = vmatpush3.bf16.msra.mxu1 %v2807_v58 }
 0xe1d   :  { %2809 = vmatprep.subr.bf16.mxu1 %v2978_v9 }
 0xe20   :  { %2811 = vmatpush3.bf16.msra.mxu1 %v2810_v62  ;;  %v1765_v62 = vcvt.s32.f32 %v3448_v8 }
 0xe21   :  { %2812 = vmatprep.subr.bf16.mxu1 %v2978_v9 }
 0xe24   :  { %2814 = vmatpush3.bf16.msra.mxu1 %v2813_v1  ;;  %v1767_v1 = vcvt.s32.f32 %v3462_v6 }
 0xe25   :  { %2815 = vmatprep.subr.bf16.mxu1 %v2978_v9 }
 0xe28   :  { %2817 = vmatpush3.bf16.msra.mxu1 %v2816_v4 }
 0xe75   :  { %v3457_v13 = vpop.permute.xlu1 %1671 }
 0xe76   :  { %v1682_v18 = vsel %vm1667_vm11, %v3457_v13, 0.0  ;;  %vm1712_vm11 = vcmp.ge.s32.totalorder %v3448_v8, 7 }
 0xe77   :  { %v1685_v14 = vsel %vm3661_vm0, %v1682_v18, 0.0  ;;  %v2039_v18 = vld [vmem:[%s3649_s8 + $0x8] sm:$0xff] }
 0xe79   :  { %v3464_v15 = vpop.permute.xlu0 %1675 }
 0xe7a   :  { %v1683_v48 = vsel %vm1668_vm12, %v3464_v15, 0.0  ;;  %vm3483_vm12 = vmand %vm3658_vm6, %vm1722_vm7  ;;  %vm849_vm7 = vcmask 518400  }
 0xe7b   :  { %v1686_v19 = vsel %vm3661_vm0, %v1683_v48, 0.0  ;;  %v3668_v27 = vsel %vm3483_vm12, 4294967295, %v3667_v27  ;;  %vm1656_vm0 = vcmask 1043200  }
 0xe7c   :  { %v1687_v17 = vadd.f32 %v1686_v19, %v1685_v14  ;;  %v2292_v19 = vld [vmem:[%s3648_s7] ss:$0 sm:$0xff]  ;;  %v2040_v14 = vld [vmem:[%s3649_s8 + $0x10] sm:$0xff] }
 0xe7d   :  { %v840_v20 = vpop.permute.xlu0 %839  ;;  %v1680_v16 = vpop.permute.xlu1 %1679 }
 0xe7e   :  { %848 = vst.msk [vmem:[#allocation2 + $0x8] sm:$0xff] %vm846_vm13, %v840_v20  ;;  %v1684_v21 = vsel %vm1669_vm14, %v1680_v16, 0.0  ;;  %vm1717_vm14 = vcmp.lt.s32.totalorder %v3462_v6, 19  ;;  %v2041_v20 = vld [vmem:[%s3649_s8 + $0x18] sm:$0xff] }
 0xe7f   :  { %v1689_v26 = vsel %vm3660_vm15, %v1684_v21, 0.0  ;;  %vm3505_vm9 = vmand %vm1717_vm14, %vm3483_vm12 }
 0xe80   :  { %v1690_v30 = vadd.f32 %v1689_v26, %v1687_v17  ;;  %v3674_v35 = vsel %vm3505_vm9, 4294967295, %v3673_v35 }
 0xe81   :  { %v1238_v22 = vpop.permute.xlu0 %1237  ;;  %v838_v31 = vpop.permute.xlu1 %837 }
 0xe82   :  { %v1691_v36 = vrot.slane %v1690_v30, 4  ;;  %1246 = vst.msk [vmem:[#allocation2 + $0x8] sm:$0xff] %vm1244_vm2, %v1238_v22  ;;  %v2043_v22 = vld [vmem:[%s3649_s8 + $0x28] sm:$0xff] }
 0xe83   :  { %847 = vst.msk [vmem:[#allocation2] sm:$0xff] %vm846_vm13, %v838_v31  ;;  %vm3487_vm13 = vmand %vm1700_vm8, %vm1707_vm10  ;;  %vm1247_vm8 = vcmask 780800  }
 0xe84   :  { %v1692_v44 = vadd.f32 %v1691_v36, %v1690_v30  ;;  %v3670_v3 = vsel %vm3487_vm13, 4294967295, %v3669_v3  ;;  %v2042_v30 = vld [vmem:[%s3649_s8 + $0x20] sm:$0xff] }
 0xe85   :  { %v1647_v23 = vpop.permute.xlu0 %1646  ;;  %v1236_v24 = vpop.permute.xlu1 %1235  ;;  %v2825_v36 = vpack.c.bf16 %v2043_v22, %v2042_v30 }
 0xe86   :  { %v1693_v25 = vrot.slane %v1692_v44, 2  ;;  %1655 = vst.msk [vmem:[#allocation2 + $0x8] sm:$0xff] %vm1653_vm3, %v1647_v23 }
 0xe87   :  { %1245 = vst.msk [vmem:[#allocation2] sm:$0xff] %vm1244_vm2, %v1236_v24  ;;  %vm3495_vm2 = vmand %vm1712_vm11, %vm3483_vm12  ;;  %vm1739_vm11 = vcmp.lt.s32.totalorder %v3462_v6, %v3450_v11 }
 0xe88   :  { %v1694_v28 = vadd.f32 %v1693_v25, %v1692_v44  ;;  %v3672_v33 = vsel %vm3495_vm2, 4294967295, %v3671_v33 }
 0xe89   :  { %v1645_v29 = vpop.permute.xlu1 %1644  ;;  %v1240_v38 = vpop.permute.xlu0 %1239 }
 0xe8a   :  { %v1695_v32 = vrot.slane %v1694_v28, 1  ;;  %1654 = vst.msk [vmem:[#allocation2] sm:$0xff] %vm1653_vm3, %v1645_v29  ;;  %vm3675_vm3 = vcmp.lt.s32.totalorder %v3453_v12, %v3450_v11 }
 0xe8c   :  { %v1696_v34 = vadd.f32 %v1695_v32, %v1694_v28  ;;  %v2045_v28 = vld [vmem:[%s3649_s8 + $0x38] sm:$0xff] }
 0xe8d   :  { %v842_v37 = vpop.permute.xlu1 %841  ;;  %v1659_v41 = vld [vmem:[#allocation2 + $0x8] sm:$0xff] }
 0xe8e   :  { %vm1734_vm4 = vcmp.eq.f32.partialorder %v3457_v13, %v1696_v34  ;;  %850 = vst.msk [vmem:[#allocation2 + $0x10] sm:$0x7] %vm849_vm7, %v842_v37  ;;  %vm1731_vm6 = vcmp.gt.f32.partialorder %v3457_v13, %v1696_v34  ;;  %vm1735_vm14 = vcmp.eq.f32.partialorder %v3464_v15, %v1696_v34  ;;  %vm1736_vm1 = vcmp.eq.f32.partialorder %v1680_v16, %v1696_v34 }
 0xe8f   :  { %vm1740_vm15 = vmand %vm1734_vm4, %vm1737_vm5  ;;  %1248 = vst.msk [vmem:[#allocation2 + $0x10] sm:$0x7] %vm1247_vm8, %v1240_v38  ;;  %vm1732_vm10 = vcmp.gt.f32.partialorder %v3464_v15, %v1696_v34  ;;  %vm1733_vm12 = vcmp.gt.f32.partialorder %v1680_v16, %v1696_v34  ;;  %vm3676_vm5 = vnez %v3670_v3  ;;  %vm3677_vm8 = vnez %v3672_v33  ;;  %v2038_v15 = vld [vmem:[%s3649_s8] sm:$0xff] }
 0xe90   :  { %vm1741_vm9 = vmand %vm1735_vm14, %vm3675_vm3  ;;  %v2819_v48 = vpack.c.bf16 %v2039_v18, %v2038_v15  ;;  %v2822_v16 = vpack.c.bf16 %v2041_v20, %v2040_v14  ;;  %v2133_v15 = vld [vmem:[%s3651_s10 + $0x18] sm:$0xff] }
 0xe91   :  { %vm1742_vm2 = vmand %vm1736_vm1, %vm1739_vm11  ;;  %v1649_v39 = vpop.permute.xlu1 %1648  ;;  %v1658_v40 = vld [vmem:[#allocation2] sm:$0xff]  ;;  %vm3679_vm1 = vnez %v3668_v27  ;;  %v2044_v27 = vld [vmem:[%s3649_s8 + $0x30] sm:$0xff] }
 0xe92   :  { %vm1743_vm7 = vmor %vm1731_vm6, %vm1740_vm15  ;;  %1657 = vst.msk [vmem:[#allocation2 + $0x10] sm:$0x7] %vm1656_vm0, %v1649_v39  ;;  %v2792_v42 = vpack.c.bf16 %v1659_v41, %v1658_v40  ;;  %vm3680_vm15 = vnez %v3674_v35  ;;  %v2828_v32 = vpack.c.bf16 %v2045_v28, %v2044_v27  ;;  %v2046_v41 = vld [vmem:[%s3649_s8 + $0x40] sm:$0xff] }
 0xe93   :  { %vm1744_vm13 = vmor %vm1732_vm10, %vm1741_vm9  ;;  %vm3681_vm9 = vcmask 154624  }
 0xe94   :  { %vm1745_vm4 = vmor %vm1733_vm12, %vm1742_vm2  ;;  %2793 = vmatpush3.bf16.msra.mxu0 %v2792_v42  ;;  %vm3683_vm12 = vcmask 149504   ;;  %vm3684_vm2 = vcmask 1042432   ;;  %v2047_v42 = vld [vmem:[%s3649_s8 + $0x48] sm:$0xff] }
 0xe95   :  { %vm3678_vm3 = vmor %vm3676_vm5, %vm3677_vm8  ;;  %2625 = vmatprep.subr.mxu0 %v2980_v10 }
 0xe96   :  { %vm1746_vm14 = vmand %vm3678_vm3, %vm1743_vm7 }
 0xe97   :  { %vm1747_vm11 = vmand %vm3679_vm1, %vm1744_vm13  ;;  %v1749_v55 = vsel %vm1746_vm14, 1.0, %v2980_v10  ;;  %vm3685_vm13 = vcmp.ge.s32.totalorder %v3450_v11, 7  ;;  %vm3687_vm14 = vmmov 0  }
 0xe98   :  { %vm1748_vm0 = vmand %vm3680_vm15, %vm1745_vm4  ;;  %v1750_v54 = vsel %vm1747_vm11, 1.0, %v2980_v10  ;;  %v1752_v43 = vsel %vm3681_vm9, %v1749_v55, 0.0  ;;  %v1730_v56 = vsel %vm3685_vm13, 1.0, %v2980_v10 }
 0xe99   :  { %v1751_v45 = vsel %vm1748_vm0, 1.0, %v2980_v10  ;;  %vm3682_vm6 = vmmov %vm3681_vm9  ;;  %v1660_v47 = vld [vmem:[#allocation2 + $0x10] sm:$0x7]  ;;  %v1763_v58 = vmul.f32 10.0, %v1730_v56  ;;  %vm2003_vm9 = vcmask 130048  }
 0xe9a   :  { %v1753_v46 = vsel %vm3682_vm6, %v1750_v54, 0.0  ;;  %v1755_v49 = vsel %vm3683_vm12, %v1751_v45, 0.0  ;;  %2626 = vmatpush3.msk.msra.mxu0 %vm3684_vm2, %v1660_v47  ;;  %vm3686_vm8 = vmmov %vm3682_vm6  ;;  %v2831_v45 = vpack.c.bf16 %v2047_v42, %v2046_v41  ;;  %vm2008_vm12 = vcmask 523264  }
 0xe9b   :  { %v1754_v59 = vadd.f32 %v1753_v46, %v1752_v43  ;;  %2818 = vmatprep.subr.bf16.mxu0 %v2978_v9  ;;  %vm3688_vm11 = vmmov %vm3682_vm6  ;;  %vm3690_vm2 = vcmask 261120  }
 0xe9c   :  { %vm3689_vm0 = vmmov %vm3682_vm6  ;;  %vm2006_vm6 = vcmask 392192  }
 0xe9d   :  { %v1756_v50 = vadd.f32 %v1755_v49, %v1754_v59  ;;  %vm3691_vm13 = vmmov %vm3690_vm2 }
 0xe9f   :  { %v1757_v51 = vrot.slane %v1756_v50, 4 }
 0xea1   :  { %v1758_v52 = vadd.f32 %v1757_v51, %v1756_v50 }
 0xea3   :  { %v1759_v53 = vrot.slane %v1758_v52, 2 }
 0xea5   :  { %v1760_v57 = vadd.f32 %v1759_v53, %v1758_v52 }
 0xea7   :  { %v1761_v60 = vrot.slane %v1760_v57, 1 }
 0xea9   :  { %v1762_v61 = vadd.f32 %v1761_v60, %v1760_v57 }
 0xeab   :  { %v1764_v0 = vadd.f32 %v1763_v58, %v1762_v61  ;;  %vm1771_vm7 = vcmp.lt.f32.partialorder %v1762_v61, 10.0 }
 0xead   :  { %vm1768_vm10 = vcmp.eq.f32.partialorder %v1765_v62, %v1764_v0  ;;  %vm1769_vm4 = vcmp.eq.f32.partialorder %v1766_v63, %v1764_v0  ;;  %vm1770_vm1 = vcmp.eq.f32.partialorder %v1767_v1, %v1764_v0  ;;  %v2130_v63 = vld [vmem:[%s3651_s10] sm:$0xff]  ;;  %v2131_v0 = vld [vmem:[%s3651_s10 + $0x8] sm:$0xff] }
 0xeae   :  { %vm1774_vm5 = vmand %vm1768_vm10, %vm1771_vm7  ;;  %vm2055_vm10 = vcmask 654336  }
 0xeaf   :  { %v1777_v2 = vsel %vm1774_vm5, 1.0, %v2980_v10  ;;  %vm1775_vm3 = vmand %vm1769_vm4, %vm1771_vm7  ;;  %vm2215_vm5 = vcmask 58368  }
 0xeb0   :  { %2628 = vmatmul.mubr.msk.f32.vlgmr.msra.gmra.mrb[32].mxu0 %vm3686_vm8, %v1777_v2  ;;  %v1778_v5 = vsel %vm1775_vm3, 1.0, %v2980_v10  ;;  %vm1776_vm15 = vmand %vm1770_vm1, %vm1771_vm7  ;;  %vm3692_vm7 = vcmask 1040384  }
 0xeb1   :  { %2630 = vmatprep.mubr.msk.f32.mxu0 %vm3687_vm14, %v2980_v10  ;;  %v1779_v4 = vsel %vm1776_vm15, 1.0, %v2980_v10  ;;  %2820 = vmatpush3.bf16.msra.mxu0 %v2819_v48  ;;  %v2293_v48 = vld [vmem:[%s3650_s9] ss:$0 sm:$0xff]  ;;  %vm3693_vm4 = vmmov %vm3690_vm2  ;;  %s2954_s9 = scalar_lea.vmem %s2224_s16, 32 }
 0xeb2   :  { %2821 = vmatprep.subr.bf16.mxu0 %v2978_v9  ;;  %p2955_p0 = scmp.ne.s32.totalorder %s2224_s16, %s2954_s9  ;;  %p2960_p2 = scmp.lt.s32.totalorder %s2954_s9, %s2954_s9 }
 0xeb4   :  { %2631 = vmatmul.mubr.msk.f32.gmra.mrb[34].mxu0 %vm3688_vm11, %v1778_v5  ;;  %p2961_p3 = por %p2960_p2, %p2959_p1 }
 0xeb5   :  { %2633 = vmatprep.mubr.msk.f32.mxu0 %vm3687_vm14, %v2980_v10  ;;  %2823 = vmatpush3.bf16.msra.mxu0 %v2822_v16 }
 0xeb6   :  { %2824 = vmatprep.subr.bf16.mxu0 %v2978_v9  ;;  %p2962_p4 = pnand %p2961_p3, %p2955_p0 }
 0xeb8   :  { %2634 = vmatmul.mubr.msk.f32.gmra.mrb[36].mxu0 %vm3689_vm0, %v1779_v4 }
 0xeb9   :  { %2697 = vmatprep.mubr.msk.f32.mxu0 %vm3687_vm14, %v2980_v10  ;;  %2826 = vmatpush3.bf16.msra.mxu0 %v2825_v36 }
 0xeba   :  { %2827 = vmatprep.subr.bf16.mxu0 %v2978_v9 }
 0xebd   :  { %2829 = vmatpush3.bf16.msra.mxu0 %v2828_v32 }
 0xebe   :  { %2830 = vmatprep.subr.bf16.mxu0 %v2978_v9 }
 0xec1   :  { %2832 = vmatpush3.bf16.msra.mxu0 %v2831_v45 }
 0xec2   :  { %2833 = vmatprep.subr.bf16.mxu0 %v2978_v9 }
 0xf83   :  { %v1858_v7 = vpop.f32.mrb[32].mxu0 }
 0xf84   :  { %v2629_v8 = vpop.f32.mrb[33].mxu0  ;;  %2669 = vmatmul.mubr.f32.vlgmr.msra.gmra.mrb[32].mxu1 %v1858_v7 }
 0xf85   :  { %2671 = vmatprep.mubr.msk.f32.mxu1 %vm3687_vm14, %v2980_v10 }
 0xf87   :  { %v1863_v11 = vpop.f32.mrb[34].mxu0 }
 0xf88   :  { %v2632_v12 = vpop.f32.mrb[35].mxu0  ;;  %2672 = vmatmul.mubr.f32.gmra.mrb[34].mxu1 %v1863_v11  ;;  %v2834_v11 = vpack.c.bf16 %v2131_v0, %v2130_v63 }
 0xf89   :  { %2674 = vmatprep.mubr.msk.f32.mxu1 %vm3687_vm14, %v2980_v10 }
 0xf8b   :  { %v1868_v13 = vpop.f32.mrb[36].mxu0 }
 0xf8c   :  { %v2635_v6 = vpop.f32.mrb[37].mxu0  ;;  %2675 = vmatmul.mubr.f32.gmra.mrb[36].mxu1 %v1868_v13 }
 0xf8d   :  { %v2132_v6 = vld [vmem:[%s3651_s10 + $0x10] sm:$0xff] }
 0xf8e   :  { %v2837_v18 = vpack.c.bf16 %v2133_v15, %v2132_v6 }
0x1057   :  { %v1961_v17 = vpop.f32.mrb[32].mxu1 }
0x1058   :  { %v1962_v21 = vadd.f32 %v2292_v19, %v1961_v17  ;;  %v2670_v26 = vpop.f32.mrb[33].mxu1 }
0x105a   :  { %v1975_v31 = vmax.f32 %v1962_v21, 0.0 }
0x105b   :  { %v1966_v44 = vpop.f32.mrb[34].mxu1 }
0x105c   :  { %v1979_v23 = vrot.slane %v1975_v31, 1  ;;  %v1967_v24 = vadd.f32 %v2292_v19, %v1966_v44  ;;  %v2673_v25 = vpop.f32.mrb[35].mxu1 }
0x105e   :  { %v1981_v29 = vmax.f32 %v1975_v31, %v1979_v23  ;;  %v1976_v3 = vmax.f32 %v1967_v24, 0.0 }
0x105f   :  { %v1971_v33 = vpop.f32.mrb[36].mxu1 }
0x1060   :  { %v1983_v34 = vrot.slane %v1976_v3, 1  ;;  %v1972_v35 = vadd.f32 %v2292_v19, %v1971_v33  ;;  %v2676_v37 = vpop.f32.mrb[37].mxu1  ;;  %v1987_v38 = vrot.slane %v1981_v29, 2  ;;  %v1991_v54 = vrot.slane %v1981_v29, 4 }
0x1061   :  { %v1995_v47 = vrot.slane %v1981_v29, 6 }
0x1062   :  { %v1985_v39 = vmax.f32 %v1976_v3, %v1983_v34  ;;  %v1977_v40 = vmax.f32 %v1972_v35, 0.0  ;;  %1988 = vrot.lane.b32.xlu0 %v1987_v38, %s2986_s23 }
0x1064   :  { %v2011_v55 = vrot.slane %v1977_v40, 1  ;;  %v2018_v43 = vrot.slane %v1985_v39, 4  ;;  %v2014_v59 = vrot.slane %v1985_v39, 2 }
0x1066   :  { %1992 = vrot.lane.b32.xlu0 %v1991_v54, %s2984_s20  ;;  %2019 = vrot.lane.b32.xlu1 %v2018_v43, %s2984_s20  ;;  %v2013_v46 = vmax.f32 %v1977_v40, %v2011_v55 }
0x1068   :  { %v2023_v49 = vrot.slane %v2013_v46, 6 }
0x106a   :  { %2015 = vrot.lane.b32.xlu0 %v2014_v59, %s2986_s23  ;;  %2027 = vrot.lane.b32.xlu1 %v2013_v46, %s2983_s1 }
0x106e   :  { %1996 = vrot.lane.b32.xlu0 %v1995_v47, %s2987_s27  ;;  %2024 = vrot.lane.b32.xlu1 %v2023_v49, %s2987_s27 }
0x1072   :  { %2000 = vrot.lane.b32.xlu1 %v1985_v39, %s2983_s1 }
0x10d4   :  { %v1989_v50 = vpop.permute.xlu0 %1988 }
0x10d5   :  { %v2004_v1 = vsel %vm2003_vm9, %v1981_v29, %v1989_v50 }
0x10d8   :  { %v1993_v51 = vpop.permute.xlu0 %1992  ;;  %v2020_v52 = vpop.permute.xlu1 %2019 }
0x10d9   :  { %v2005_v5 = vsel %vm3691_vm13, %v2004_v1, %v1993_v51 }
0x10dc   :  { %v2016_v53 = vpop.permute.xlu0 %2015  ;;  %v2028_v56 = vpop.permute.xlu1 %2027 }
0x10dd   :  { %v2030_v57 = vsel %vm2003_vm9, %v1985_v39, %v2016_v53 }
0x10de   :  { %v2031_v58 = vsel %vm3690_vm2, %v2030_v57, %v2020_v52 }
0x10e0   :  { %v2025_v60 = vpop.permute.xlu1 %2024  ;;  %v1997_v61 = vpop.permute.xlu0 %1996 }
0x10e1   :  { %v2032_v62 = vsel %vm2006_vm6, %v2031_v58, %v2025_v60  ;;  %v2007_v7 = vsel %vm2006_vm6, %v2005_v5, %v1997_v61 }
0x10e2   :  { %v2033_v2 = vsel %vm2008_vm12, %v2032_v62, %v2028_v56 }
0x10e3   :  { %v2035_v4 = vrot.slane %v2033_v2, 1 }
0x10e4   :  { %v2001_v8 = vpop.permute.xlu1 %2000 }
0x10e5   :  { %v2009_v12 = vsel %vm2008_vm12, %v2007_v7, %v2001_v8 }
0x10e6   :  { %v2037_v13 = vsel %vm3692_vm7, %v2009_v12, %v2035_v4 }
0x10e7   :  { %2698 = vmatmul.mubr.msk.f32.vlgmr.msra.gmra.mrb[38].mxu0 %vm2055_vm10, %v2037_v13 }
0x10e8   :  { %2835 = vmatpush3.bf16.msra.mxu0 %v2834_v11  ;;  %2708 = vmatprep.mubr.msk.f32.mxu0 %vm3687_vm14, %v2980_v10 }
0x10e9   :  { %2836 = vmatprep.subr.bf16.mxu0 %v2978_v9  ;;  %v2295_v9 = vld [vmem:[%s3652_s11] ss:$0 sm:$0xff] }
0x10ec   :  { %2838 = vmatpush3.bf16.msra.mxu0 %v2837_v18 }
0x11ba   :  { %v2125_v19 = vpop.f32.mrb[38].mxu0 }
0x11bb   :  { %v2126_v14 = vadd.f32 %v2293_v48, %v2125_v19  ;;  %v2699_v20 = vpop.f32.mrb[39].mxu0 }
0x11bd   :  { %v2129_v10 = vmax.f32 %v2126_v14, 0.0 }
0x11bf   :  { %2709 = vmatmul.mubr.msk.f32.vlgmr.msra.gmra.mrb[40].mxu0 %vm3693_vm4, %v2129_v10 }
0x1292   :  { %v2210_v16 = vpop.f32.mrb[40].mxu0 }
0x1293   :  { %v2211_v17 = vadd.f32 %v2295_v9, %v2210_v16  ;;  %v2710_v21 = vpop.f32.mrb[41].mxu0 }
0x1295   :  { %v2214_v26 = vmax.f32 %v2211_v17, 0.0 }
0x1297   :  { %2216 = vst.msk [vmem:[#allocation3] sm:$0x3] %vm2215_vm5, %v2214_v26 }
0x1298   :  { %2965 = shalt.err (!%p2962_p4)
}
0x1299   :  { %s2966_s11 = scalar_lea.hbm %s3653_s12, 32 }
0x129a   :  { %p2967_p5 = scmp.ne.s32.totalorder %s3653_s12, %s2966_s11  ;;  %p2970_p6 = scmp.lt.u32.totalorder %s2966_s11, %s3653_s12 }
0x129c   :  { %p2972_p7 = pnand %p2970_p6, %p2967_p5 }
0x129e   :  { %2975 = shalt.err (!%p2972_p7)
}
0x129f   :  { %2226 = dma.vmem_to_hbm [thread:$0]  %s2224_s16, 32, %s3653_s12, [#allocation4]  }
0x12a0   :  { %2976 = dma.done.wait [#allocation4], 32  }
0x12a1   :  { %2977 = vsyncadd [#allocation4], 4294967264 }
0x12a2   :  { %2230 = vsyncpa [#allocation4], 1 }

</bundles_post_ra>
